<compile_context>
chip_gen: v7x
topology: tpu7x:2x2x1
jax: 0.10.0
libtpu: 0.0.40
codegen_flags: <defaults>
</compile_context>

<pallas_src>
import jax
import jax.numpy as jnp
from jax.experimental import pallas as pl
from jax.experimental.pallas import tpu as pltpu


# ----------------------------- model dims (small, synthetic) ------------------------
BATCH      = 2
SRC_LEN    = 8
TRG_LEN    = 8
EMB_DIM    = 32
HID_DIM    = 32
LATENT_NUM = 8
VOCAB      = 16
LANE       = 128          # lane-dense padding for all slabs / outputs

_VMEM = pl.BlockSpec(memory_space=pltpu.MemorySpace.VMEM)
_SMEM = pl.BlockSpec(memory_space=pltpu.MemorySpace.SMEM)


def _r8(n):  # round rows up to a sublane multiple
    return ((n + 7) // 8) * 8


# --------------------------- weight slab layout (row offsets) -------------------------
_ROW_ENC_W  = 0                                  # [E, H]
_ROW_ENC_WH = _ROW_ENC_W  + _r8(EMB_DIM)         # [E, H]
_ROW_MULV   = _ROW_ENC_WH + _r8(EMB_DIM)         # [H, 2L]   (mu | logvar fused)
_ROW_WHH    = _ROW_MULV   + _r8(HID_DIM)         # [H, H]
_ROW_WCH    = _ROW_WHH    + _r8(HID_DIM)         # [H, H]
_ROW_WOUT   = _ROW_WCH    + _r8(HID_DIM)         # [H, 128]  (vocab lane-padded)
_ROW_TOK2H  = _ROW_WOUT   + _r8(HID_DIM)         # [V, H]    (dec_embed @ dec_wie)
_ROW_FC     = _ROW_TOK2H  + _r8(VOCAB)           # [L, H]
_ROW_BIAS   = _ROW_FC     + _r8(LATENT_NUM)      # 8 bias rows
W_ROWS      = _ROW_BIAS   + 8

# ------------------------- activation slab layout (row offsets) -----------------------
_ROW_SRC_EMB = 0                                 # [S*B, E]
_ROW_POOL    = _ROW_SRC_EMB + _r8(SRC_LEN * BATCH)   # [B, S*B]
_ROW_EPS     = _ROW_POOL    + _r8(BATCH)             # [B, L]
_ROW_TRG_OH  = _ROW_EPS     + _r8(BATCH)             # [T*B, V]
A_ROWS       = _ROW_TRG_OH  + _r8(TRG_LEN * BATCH)


# ----------------------------------- fused kernel ------------------------------------
def _vae_fused_kernel(tf_ref, w_ref, a_ref, out_ref, mulv_ref):
    f32 = jnp.float32
    T, B, VP = out_ref.shape
    H, E, L, V = HID_DIM, EMB_DIM, LATENT_NUM, VOCAB
    SB = SRC_LEN * B

    dot = lambda a, b: jnp.dot(a, b, preferred_element_type=f32)

    # ---------------- static slab slices (no per-array DMA) ----------------
    enc_w  = w_ref[_ROW_ENC_W:_ROW_ENC_W + E, 0:H]
    enc_wh = w_ref[_ROW_ENC_WH:_ROW_ENC_WH + E, 0:H]
    w_mulv = w_ref[_ROW_MULV:_ROW_MULV + H, :]             # [H, 128], cols >= 2L are zero
    w_whh  = w_ref[_ROW_WHH:_ROW_WHH + H, 0:H]
    w_wch  = w_ref[_ROW_WCH:_ROW_WCH + H, 0:H]
    w_out  = w_ref[_ROW_WOUT:_ROW_WOUT + H, :]              # [H, 128], cols >= V are zero
    tok2h  = w_ref[_ROW_TOK2H:_ROW_TOK2H + V, 0:H]          # [V, H] = dec_embed @ dec_wie
    w_fc   = w_ref[_ROW_FC:_ROW_FC + L, 0:H]
    enc_b  = w_ref[_ROW_BIAS + 0:_ROW_BIAS + 1, 0:H]
    enc_bh = w_ref[_ROW_BIAS + 1:_ROW_BIAS + 2, 0:H]
    b_mulv = w_ref[_ROW_BIAS + 2:_ROW_BIAS + 3, :]          # [1, 128]
    b_fc   = w_ref[_ROW_BIAS + 3:_ROW_BIAS + 4, 0:H]
    dec_bh = w_ref[_ROW_BIAS + 4:_ROW_BIAS + 5, 0:H]
    b_out  = w_ref[_ROW_BIAS + 5:_ROW_BIAS + 6, :]          # [1, 128], padded lanes = -1e30

    x      = a_ref[_ROW_SRC_EMB:_ROW_SRC_EMB + SB, 0:E]     # [S*B, E]
    pool   = a_ref[_ROW_POOL:_ROW_POOL + B, 0:SB]           # [B, S*B] time-mean matrix
    eps    = a_ref[_ROW_EPS:_ROW_EPS + B, 0:L]               # [B, L]
    trg_oh = a_ref[_ROW_TRG_OH:_ROW_TRG_OH + T * B, 0:V]     # [T*B, V]

    # ---------------- encoder (stand-in) ----------------
    enc     = jnp.tanh(dot(x, enc_w) + enc_b)                 # [S*B, H]
    pooled  = dot(pool, x)                                    # [B, E]   mean_t emb
    hidden  = jnp.tanh(dot(pooled, enc_wh) + enc_bh)          # [B, H]
    context = dot(pool, enc)                                  # [B, H]   mean_t enc

    # ---------------- re_hidden (VAE's own compute) ----------------
    mulv = dot(hidden, w_mulv) + b_mulv                       # [B, 128] (mu | logvar | 0...)
    mulv_ref[...] = mulv                                      # single lane-dense store
    mu     = mulv[:, 0:L]
    logvar = mulv[:, L:2 * L]
    z = jnp.exp(logvar * 0.5) * eps + mu                      # [B, L]
    hidden = dot(z, w_fc) + b_fc                              # [B, H]

    # ---------------- decoder: loop-invariant work hoisted ----------------
    ctx_pre  = dot(context, w_wch) + dec_bh                   # [B, H]
    b_out_b  = jnp.broadcast_to(b_out, (B, VP))               # hoisted (no per-step broadcast)
    trg_proj = dot(trg_oh, tok2h)                             # [T*B, H] all teacher-forced embeds
    lane_ids = jax.lax.broadcasted_iota(jnp.int32, (B, VP), 1)

    out_ref[0] = jnp.zeros((B, VP), f32)                      # outputs[0] stays zero (as in PyTorch)
    hid = hidden
    inp_proj = trg_proj[0:B, :]                               # dec_input = trg[0]

    # fully unrolled tiny fixed-length loop (T-1 steps)
    for t in range(1, T):
        h_new  = jnp.tanh(inp_proj + dot(hid, w_whh) + ctx_pre)   # [B, H]
        # NOTE: argmax is taken on the biased logits (bias differs per vocab lane, so
        # dropping it from the argmax path would change semantics).
        logits = dot(h_new, w_out) + b_out_b                       # [B, 128], pad lanes ~ -1e30
        out_ref[t] = logits                                        # lane-dense store

        # first-occurrence argmax over vocab lanes (padded lanes can never win)
        m = jnp.max(logits, axis=-1, keepdims=True)
        cand = jnp.where(logits >= m, lane_ids, VP)
        top1 = jnp.min(cand, axis=-1, keepdims=True)
        top1_oh = (lane_ids == top1).astype(f32)                   # [B, 128]

        gen_proj = dot(top1_oh[:, 0:V], tok2h)                     # [B, H] generated-token path
        tf_f = (tf_ref[t] > 0).astype(f32)                         # SMEM scalar
        inp_proj = tf_f * trg_proj[t * B:(t + 1) * B, :] + (1.0 - tf_f) * gen_proj
        hid = h_new


# ------------------------------- wrapper-side slab packing ----------------------------
def _build_weight_slab(params):
    def put(slab, arr, r0, c0=0):
        rr, cc = arr.shape
        return slab.at[r0:r0 + rr, c0:c0 + cc].set(arr)

    slab = jnp.zeros((W_ROWS, LANE), jnp.float32)
    tok2h  = params["dec_embed"] @ params["dec_wie"]                       # [V, H]
    w_mulv = jnp.concatenate([params["w_mu"], params["w_lv"]], axis=1)     # [H, 2L]
    b_mulv = jnp.concatenate([params["b_mu"], params["b_lv"]], axis=1)     # [1, 2L]
    bout_pad = jnp.full((1, LANE), -1e30, jnp.float32).at[:, :VOCAB].set(params["dec_bout"])

    slab = put(slab, params["enc_w"],   _ROW_ENC_W)
    slab = put(slab, params["enc_wh"],  _ROW_ENC_WH)
    slab = put(slab, w_mulv,            _ROW_MULV)
    slab = put(slab, params["dec_whh"], _ROW_WHH)
    slab = put(slab, params["dec_wch"], _ROW_WCH)
    slab = put(slab, params["dec_wout"], _ROW_WOUT)        # cols >= V stay zero
    slab = put(slab, tok2h,             _ROW_TOK2H)
    slab = put(slab, params["w_fc"],    _ROW_FC)
    slab = put(slab, params["enc_b"],   _ROW_BIAS + 0)
    slab = put(slab, params["enc_bh"],  _ROW_BIAS + 1)
    slab = put(slab, b_mulv,            _ROW_BIAS + 2)
    slab = put(slab, params["b_fc"],    _ROW_BIAS + 3)
    slab = put(slab, params["dec_bh"],  _ROW_BIAS + 4)
    slab = put(slab, bout_pad,          _ROW_BIAS + 5)
    return slab


def _build_act_slab(src_emb_flat, pool_mat, eps, trg_oh_flat):
    slab = jnp.zeros((A_ROWS, LANE), jnp.float32)
    slab = slab.at[_ROW_SRC_EMB:_ROW_SRC_EMB + src_emb_flat.shape[0], 0:EMB_DIM].set(src_emb_flat)
    slab = slab.at[_ROW_POOL:_ROW_POOL + pool_mat.shape[0], 0:pool_mat.shape[1]].set(pool_mat)
    slab = slab.at[_ROW_EPS:_ROW_EPS + eps.shape[0], 0:LATENT_NUM].set(eps)
    slab = slab.at[_ROW_TRG_OH:_ROW_TRG_OH + trg_oh_flat.shape[0], 0:VOCAB].set(trg_oh_flat)
    return slab


# ---------------------------------- VAE forward ---------------------------------------
def vae_forward(params, src, src_len, trg, key, teacher_forcing_ratio=0.5):
    """Mirrors VAE.forward: returns (outputs [trg_len, B, vocab], mu, logvar)."""
    del src_len  # stand-in encoder does not pack sequences
    src_tm = src.T                                   # [S, B]  (PyTorch: src.transpose(0, 1))
    trg_tm = trg.T                                   # [T, B]
    seq_len, batch_size = src_tm.shape
    trg_len = trg_tm.shape[0]

    k_eps, k_tf = jax.random.split(key)
    eps = jax.random.normal(k_eps, (batch_size, LATENT_NUM), dtype=jnp.float32)
    # TODO(synk): PyTorch draws random.random() per step on the host; here the
    # teacher-force coin flips are drawn once from a JAX key (same distribution).
    tf_mask = (jax.random.uniform(k_tf, (trg_len,)) < teacher_forcing_ratio).astype(jnp.int32)

    # wrapper-side layout plumbing (done once, outside the kernel)
    src_emb_flat = jnp.take(params["enc_embed"], src_tm.reshape(-1), axis=0)         # [S*B, E]
    pool_mat = jnp.tile(jnp.eye(batch_size, dtype=jnp.float32), (1, seq_len)) / seq_len
    trg_oh_flat = jax.nn.one_hot(trg_tm.reshape(-1), VOCAB, dtype=jnp.float32)        # [T*B, V]

    w_slab = _build_weight_slab(params)
    a_slab = _build_act_slab(src_emb_flat, pool_mat, eps, trg_oh_flat)

    # TODO(synk): single-grid kernel uses one TensorCore; add a "parallel" grid axis if
    # this is ever run over many independent sequences (v7x has 2 TCs/chip).
    out_pad, mulv = pl.pallas_call(
        _vae_fused_kernel,
        out_shape=(
            jax.ShapeDtypeStruct((trg_len, batch_size, LANE), jnp.float32),  # lane-padded logits
            jax.ShapeDtypeStruct((batch_size, LANE), jnp.float32),           # mu|logvar fused
        ),
        in_specs=[_SMEM, _VMEM, _VMEM],
        out_specs=(_VMEM, _VMEM),
    )(tf_mask, w_slab, a_slab)

    outputs = out_pad[:, :, :VOCAB]
    mu = mulv[:, :LATENT_NUM]
    logvar = mulv[:, LATENT_NUM:2 * LATENT_NUM]
    return outputs, mu, logvar


# --------------------------------- parameter init -------------------------------------
def init_params(key):
    ks = jax.random.split(key, 16)
    n = lambda k, shape: (jax.random.normal(k, shape, jnp.float32) * 0.1)
    return {
        # encoder stand-in
        "enc_embed": n(ks[0], (VOCAB, EMB_DIM)),
        "enc_w":     n(ks[1], (EMB_DIM, HID_DIM)),
        "enc_b":     n(ks[2], (1, HID_DIM)),
        "enc_wh":    n(ks[3], (EMB_DIM, HID_DIM)),
        "enc_bh":    n(ks[4], (1, HID_DIM)),
        # VAE heads (nn.Linear(hid_dim, LATENT_NUM) x2, nn.Linear(LATENT_NUM, hid_dim))
        "w_mu": n(ks[5], (HID_DIM, LATENT_NUM)),  "b_mu": n(ks[6], (1, LATENT_NUM)),
        "w_lv": n(ks[7], (HID_DIM, LATENT_NUM)),  "b_lv": n(ks[8], (1, LATENT_NUM)),
        "w_fc": n(ks[9], (LATENT_NUM, HID_DIM)),  "b_fc": n(ks[10], (1, HID_DIM)),
        # decoder stand-in
        "dec_embed": n(ks[11], (VOCAB, EMB_DIM)),
        "dec_wie":   n(ks[12], (EMB_DIM, HID_DIM)),
        "dec_whh":   n(ks[13], (HID_DIM, HID_DIM)),
        "dec_wch":   n(ks[14], (HID_DIM, HID_DIM)),
        "dec_bh":    jnp.zeros((1, HID_DIM), jnp.float32),
        "dec_wout":  n(ks[15], (HID_DIM, VOCAB)),
        "dec_bout":  jnp.zeros((1, VOCAB), jnp.float32),
    }


# ------------------------------------- main --------------------------------------------
if __name__ == "__main__":
    root = jax.random.PRNGKey(0)
    k_param, k_src, k_trg, k_fwd = jax.random.split(root, 4)

    params = init_params(k_param)

    # batch-first token inputs, exactly as passed to the PyTorch forward
    src = jax.random.randint(k_src, (BATCH, SRC_LEN), 0, VOCAB, dtype=jnp.int32)
    trg = jax.random.randint(k_trg, (BATCH, TRG_LEN), 0, VOCAB, dtype=jnp.int32)
    src_len = jnp.full((BATCH,), SRC_LEN, dtype=jnp.int32)

    fwd = jax.jit(vae_forward)
    outputs, mu, logvar = fwd(params, src, src_len, trg, k_fwd, 0.5)
    jax.block_until_ready((outputs, mu, logvar))

    assert outputs.shape == (TRG_LEN, BATCH, VOCAB)
    assert mu.shape == (BATCH, LATENT_NUM) and logvar.shape == (BATCH, LATENT_NUM)
    assert bool(jnp.all(outputs[0] == 0.0))            # outputs[0] untouched, as in PyTorch
    assert bool(jnp.all(jnp.isfinite(outputs))) and bool(jnp.all(jnp.isfinite(mu)))

    print("KERNEL_OK")
</pallas_src>

<mosaic_0001>
module attributes {stable_mosaic.version = 11 : i64} {
  func.func @_vae_fused_kernel(%arg0: memref<8xi32, #tpu.memory_space<smem>>, %arg1: memref<224x128xf32, #tpu.memory_space<vmem>>, %arg2: memref<48x128xf32, #tpu.memory_space<vmem>>, %arg3: memref<8x2x128xf32, #tpu.memory_space<vmem>>, %arg4: memref<2x128xf32, #tpu.memory_space<vmem>>) attributes {dimension_semantics = [], scalar_prefetch = 0 : i64, scratch_operands = 0 : i64, tpu.core_type = #tpu.core_type<tc>} {
    %c0 = arith.constant 0 : index
    %c0_0 = arith.constant 0 : index
    %0 = vector.load %arg1[%c0, %c0_0] : memref<224x128xf32, #tpu.memory_space<vmem>>, vector<32x32xf32>
    %c32 = arith.constant 32 : index
    %c0_1 = arith.constant 0 : index
    %1 = vector.load %arg1[%c32, %c0_1] : memref<224x128xf32, #tpu.memory_space<vmem>>, vector<32x32xf32>
    %c64 = arith.constant 64 : index
    %c0_2 = arith.constant 0 : index
    %2 = vector.load %arg1[%c64, %c0_2] : memref<224x128xf32, #tpu.memory_space<vmem>>, vector<32x128xf32>
    %c96 = arith.constant 96 : index
    %c0_3 = arith.constant 0 : index
    %3 = vector.load %arg1[%c96, %c0_3] : memref<224x128xf32, #tpu.memory_space<vmem>>, vector<32x32xf32>
    %c128 = arith.constant 128 : index
    %c0_4 = arith.constant 0 : index
    %4 = vector.load %arg1[%c128, %c0_4] : memref<224x128xf32, #tpu.memory_space<vmem>>, vector<32x32xf32>
    %c160 = arith.constant 160 : index
    %c0_5 = arith.constant 0 : index
    %5 = vector.load %arg1[%c160, %c0_5] : memref<224x128xf32, #tpu.memory_space<vmem>>, vector<32x128xf32>
    %c192 = arith.constant 192 : index
    %c0_6 = arith.constant 0 : index
    %6 = vector.load %arg1[%c192, %c0_6] : memref<224x128xf32, #tpu.memory_space<vmem>>, vector<16x32xf32>
    %c208 = arith.constant 208 : index
    %c0_7 = arith.constant 0 : index
    %7 = vector.load %arg1[%c208, %c0_7] : memref<224x128xf32, #tpu.memory_space<vmem>>, vector<8x32xf32>
    %c216 = arith.constant 216 : index
    %c0_8 = arith.constant 0 : index
    %8 = vector.load %arg1[%c216, %c0_8] : memref<224x128xf32, #tpu.memory_space<vmem>>, vector<1x32xf32>
    %c217 = arith.constant 217 : index
    %c0_9 = arith.constant 0 : index
    %9 = vector.load %arg1[%c217, %c0_9] : memref<224x128xf32, #tpu.memory_space<vmem>>, vector<1x32xf32>
    %c218 = arith.constant 218 : index
    %c0_10 = arith.constant 0 : index
    %10 = vector.load %arg1[%c218, %c0_10] : memref<224x128xf32, #tpu.memory_space<vmem>>, vector<1x128xf32>
    %c219 = arith.constant 219 : index
    %c0_11 = arith.constant 0 : index
    %11 = vector.load %arg1[%c219, %c0_11] : memref<224x128xf32, #tpu.memory_space<vmem>>, vector<1x32xf32>
    %c220 = arith.constant 220 : index
    %c0_12 = arith.constant 0 : index
    %12 = vector.load %arg1[%c220, %c0_12] : memref<224x128xf32, #tpu.memory_space<vmem>>, vector<1x32xf32>
    %c221 = arith.constant 221 : index
    %c0_13 = arith.constant 0 : index
    %13 = vector.load %arg1[%c221, %c0_13] : memref<224x128xf32, #tpu.memory_space<vmem>>, vector<1x128xf32>
    %c0_14 = arith.constant 0 : index
    %c0_15 = arith.constant 0 : index
    %14 = vector.load %arg2[%c0_14, %c0_15] : memref<48x128xf32, #tpu.memory_space<vmem>>, vector<16x32xf32>
    %c16 = arith.constant 16 : index
    %c0_16 = arith.constant 0 : index
    %15 = vector.load %arg2[%c16, %c0_16] : memref<48x128xf32, #tpu.memory_space<vmem>>, vector<2x16xf32>
    %c24 = arith.constant 24 : index
    %c0_17 = arith.constant 0 : index
    %16 = vector.load %arg2[%c24, %c0_17] : memref<48x128xf32, #tpu.memory_space<vmem>>, vector<2x8xf32>
    %c32_18 = arith.constant 32 : index
    %c0_19 = arith.constant 0 : index
    %17 = vector.load %arg2[%c32_18, %c0_19] : memref<48x128xf32, #tpu.memory_space<vmem>>, vector<16x16xf32>
    %cst = arith.constant dense<0.000000e+00> : vector<16x32xf32>
    %18 = tpu.matmul %14, %0, %cst {dimension_numbers = #tpu.dot_dimension_numbers<[1], [0], [0], [1], [0, 0, 1, 1], [], []>} : vector<16x32xf32>, vector<32x32xf32>, vector<16x32xf32> -> vector<16x32xf32>
    %19 = vector.broadcast %8 : vector<1x32xf32> to vector<16x32xf32>
    %20 = arith.addf %18, %19 : vector<16x32xf32>
    %21 = math.tanh %20 : vector<16x32xf32>
    %cst_20 = arith.constant dense<0.000000e+00> : vector<2x32xf32>
    %22 = tpu.matmul %15, %14, %cst_20 {dimension_numbers = #tpu.dot_dimension_numbers<[1], [0], [0], [1], [0, 0, 1, 1], [], []>} : vector<2x16xf32>, vector<16x32xf32>, vector<2x32xf32> -> vector<2x32xf32>
    %cst_21 = arith.constant dense<0.000000e+00> : vector<2x32xf32>
    %23 = tpu.matmul %22, %1, %cst_21 {dimension_numbers = #tpu.dot_dimension_numbers<[1], [0], [0], [1], [0, 0, 1, 1], [], []>} : vector<2x32xf32>, vector<32x32xf32>, vector<2x32xf32> -> vector<2x32xf32>
    %24 = vector.broadcast %9 : vector<1x32xf32> to vector<2x32xf32>
    %25 = arith.addf %23, %24 : vector<2x32xf32>
    %26 = math.tanh %25 : vector<2x32xf32>
    %cst_22 = arith.constant dense<0.000000e+00> : vector<2x32xf32>
    %27 = tpu.matmul %15, %21, %cst_22 {dimension_numbers = #tpu.dot_dimension_numbers<[1], [0], [0], [1], [0, 0, 1, 1], [], []>} : vector<2x16xf32>, vector<16x32xf32>, vector<2x32xf32> -> vector<2x32xf32>
    %cst_23 = arith.constant dense<0.000000e+00> : vector<2x128xf32>
    %28 = tpu.matmul %26, %2, %cst_23 {dimension_numbers = #tpu.dot_dimension_numbers<[1], [0], [0], [1], [0, 0, 1, 1], [], []>} : vector<2x32xf32>, vector<32x128xf32>, vector<2x128xf32> -> vector<2x128xf32>
    %29 = vector.broadcast %10 : vector<1x128xf32> to vector<2x128xf32>
    %30 = arith.addf %28, %29 : vector<2x128xf32>
    %c0_24 = arith.constant 0 : index
    %c0_25 = arith.constant 0 : index
    %31 = vector.load %arg4[%c0_24, %c0_25] : memref<2x128xf32, #tpu.memory_space<vmem>>, vector<2x128xf32>
    tpu.vector_store %arg4[%c0_24, %c0_25], %30 {strides = array<i32>} : memref<2x128xf32, #tpu.memory_space<vmem>>, vector<2x128xf32>,
    %32 = vector.extract_strided_slice %30 {offsets = [0, 0], sizes = [2, 8], strides = [1, 1]} : vector<2x128xf32> to vector<2x8xf32>
    %33 = vector.extract_strided_slice %30 {offsets = [0, 8], sizes = [2, 8], strides = [1, 1]} : vector<2x128xf32> to vector<2x8xf32>
    %cst_26 = arith.constant 5.000000e-01 : f32
    %34 = vector.broadcast %cst_26 : f32 to vector<2x8xf32>
    %35 = arith.mulf %33, %34 : vector<2x8xf32>
    %36 = math.exp %35 : vector<2x8xf32>
    %37 = arith.mulf %36, %16 : vector<2x8xf32>
    %38 = arith.addf %37, %32 : vector<2x8xf32>
    %cst_27 = arith.constant dense<0.000000e+00> : vector<2x32xf32>
    %39 = tpu.matmul %38, %7, %cst_27 {dimension_numbers = #tpu.dot_dimension_numbers<[1], [0], [0], [1], [0, 0, 1, 1], [], []>} : vector<2x8xf32>, vector<8x32xf32>, vector<2x32xf32> -> vector<2x32xf32>
    %40 = vector.broadcast %11 : vector<1x32xf32> to vector<2x32xf32>
    %41 = arith.addf %39, %40 : vector<2x32xf32>
    %cst_28 = arith.constant dense<0.000000e+00> : vector<2x32xf32>
    %42 = tpu.matmul %27, %4, %cst_28 {dimension_numbers = #tpu.dot_dimension_numbers<[1], [0], [0], [1], [0, 0, 1, 1], [], []>} : vector<2x32xf32>, vector<32x32xf32>, vector<2x32xf32> -> vector<2x32xf32>
    %43 = vector.broadcast %12 : vector<1x32xf32> to vector<2x32xf32>
    %44 = arith.addf %42, %43 : vector<2x32xf32>
    %45 = vector.shape_cast %13 : vector<1x128xf32> to vector<1x128xf32>
    %46 = vector.broadcast %45 : vector<1x128xf32> to vector<2x128xf32>
    %cst_29 = arith.constant dense<0.000000e+00> : vector<16x32xf32>
    %47 = tpu.matmul %17, %6, %cst_29 {dimension_numbers = #tpu.dot_dimension_numbers<[1], [0], [0], [1], [0, 0, 1, 1], [], []>} : vector<16x16xf32>, vector<16x32xf32>, vector<16x32xf32> -> vector<16x32xf32>
    %48 = tpu.iota {dimensions = array<i32: 1>} : vector<2x128xi32>
    %cst_30 = arith.constant 0.000000e+00 : f32
    %49 = vector.broadcast %cst_30 : f32 to vector<2x128xf32>
    %c0_31 = arith.constant 0 : index
    %c0_32 = arith.constant 0 : index
    %c0_33 = arith.constant 0 : index
    %50 = vector.load %arg3[%c0_31, %c0_32, %c0_33] : memref<8x2x128xf32, #tpu.memory_space<vmem>>, vector<1x2x128xf32>
    %51 = vector.shape_cast %50 : vector<1x2x128xf32> to vector<2x128xf32>
    %52 = vector.shape_cast %49 : vector<2x128xf32> to vector<1x2x128xf32>
    tpu.vector_store %arg3[%c0_31, %c0_32, %c0_33], %52 {strides = array<i32>} : memref<8x2x128xf32, #tpu.memory_space<vmem>>, vector<1x2x128xf32>,
    %53 = vector.extract_strided_slice %47 {offsets = [0, 0], sizes = [2, 32], strides = [1, 1]} : vector<16x32xf32> to vector<2x32xf32>
    %cst_34 = arith.constant dense<0.000000e+00> : vector<2x32xf32>
    %54 = tpu.matmul %41, %3, %cst_34 {dimension_numbers = #tpu.dot_dimension_numbers<[1], [0], [0], [1], [0, 0, 1, 1], [], []>} : vector<2x32xf32>, vector<32x32xf32>, vector<2x32xf32> -> vector<2x32xf32>
    %55 = arith.addf %53, %54 : vector<2x32xf32>
    %56 = arith.addf %55, %44 : vector<2x32xf32>
    %57 = math.tanh %56 : vector<2x32xf32>
    %cst_35 = arith.constant dense<0.000000e+00> : vector<2x128xf32>
    %58 = tpu.matmul %57, %5, %cst_35 {dimension_numbers = #tpu.dot_dimension_numbers<[1], [0], [0], [1], [0, 0, 1, 1], [], []>} : vector<2x32xf32>, vector<32x128xf32>, vector<2x128xf32> -> vector<2x128xf32>
    %59 = arith.addf %58, %46 : vector<2x128xf32>
    %c1 = arith.constant 1 : index
    %c0_36 = arith.constant 0 : index
    %c0_37 = arith.constant 0 : index
    %60 = vector.load %arg3[%c1, %c0_36, %c0_37] : memref<8x2x128xf32, #tpu.memory_space<vmem>>, vector<1x2x128xf32>
    %61 = vector.shape_cast %60 : vector<1x2x128xf32> to vector<2x128xf32>
    %62 = vector.shape_cast %59 : vector<2x128xf32> to vector<1x2x128xf32>
    tpu.vector_store %arg3[%c1, %c0_36, %c0_37], %62 {strides = array<i32>} : memref<8x2x128xf32, #tpu.memory_space<vmem>>, vector<1x2x128xf32>,
    %cst_38 = arith.constant dense<0xFF800000> : vector<2xf32>
    %63 = vector.multi_reduction <maximumf>, %59, %cst_38 [1] : vector<2x128xf32> to vector<2xf32>
    %64 = vector.shape_cast %63 : vector<2xf32> to vector<2x1xf32>
    %65 = vector.broadcast %64 : vector<2x1xf32> to vector<2x128xf32>
    %66 = arith.cmpf oge, %59, %65 : vector<2x128xf32>
    %c128_i32 = arith.constant 128 : i32
    %67 = vector.broadcast %c128_i32 : i32 to vector<2x128xi32>
    %68 = arith.select %66, %48, %67 : vector<2x128xi1>, vector<2x128xi32>
    %cst_39 = arith.constant dense<2147483647> : vector<2xi32>
    %69 = vector.multi_reduction <minsi>, %68, %cst_39 [1] : vector<2x128xi32> to vector<2xi32>
    %70 = vector.shape_cast %69 : vector<2xi32> to vector<2x1xi32>
    %71 = vector.broadcast %70 : vector<2x1xi32> to vector<2x128xi32>
    %72 = arith.cmpi eq, %48, %71 : vector<2x128xi32>
    %73 = arith.extui %72 : vector<2x128xi1> to vector<2x128xi32>
    %74 = arith.sitofp %73 : vector<2x128xi32> to vector<2x128xf32>
    %75 = vector.extract_strided_slice %74 {offsets = [0, 0], sizes = [2, 16], strides = [1, 1]} : vector<2x128xf32> to vector<2x16xf32>
    %cst_40 = arith.constant dense<0.000000e+00> : vector<2x32xf32>
    %76 = tpu.matmul %75, %6, %cst_40 {dimension_numbers = #tpu.dot_dimension_numbers<[1], [0], [0], [1], [0, 0, 1, 1], [], []>} : vector<2x16xf32>, vector<16x32xf32>, vector<2x32xf32> -> vector<2x32xf32>
    %c1_41 = arith.constant 1 : index
    %77 = memref.load %arg0[%c1_41] : memref<8xi32, #tpu.memory_space<smem>>
    %c0_i32 = arith.constant 0 : i32
    %78 = arith.cmpi sgt, %77, %c0_i32 : i32
    %79 = arith.extui %78 : i1 to i32
    %80 = arith.sitofp %79 : i32 to f32
    %81 = vector.extract_strided_slice %47 {offsets = [2, 0], sizes = [2, 32], strides = [1, 1]} : vector<16x32xf32> to vector<2x32xf32>
    %82 = vector.broadcast %80 : f32 to vector<2x32xf32>
    %83 = arith.mulf %82, %81 : vector<2x32xf32>
    %cst_42 = arith.constant 1.000000e+00 : f32
    %84 = arith.subf %cst_42, %80 : f32
    %85 = vector.broadcast %84 : f32 to vector<2x32xf32>
    %86 = arith.mulf %85, %76 : vector<2x32xf32>
    %87 = arith.addf %83, %86 : vector<2x32xf32>
    %cst_43 = arith.constant dense<0.000000e+00> : vector<2x32xf32>
    %88 = tpu.matmul %57, %3, %cst_43 {dimension_numbers = #tpu.dot_dimension_numbers<[1], [0], [0], [1], [0, 0, 1, 1], [], []>} : vector<2x32xf32>, vector<32x32xf32>, vector<2x32xf32> -> vector<2x32xf32>
    %89 = arith.addf %87, %88 : vector<2x32xf32>
    %90 = arith.addf %89, %44 : vector<2x32xf32>
    %91 = math.tanh %90 : vector<2x32xf32>
    %cst_44 = arith.constant dense<0.000000e+00> : vector<2x128xf32>
    %92 = tpu.matmul %91, %5, %cst_44 {dimension_numbers = #tpu.dot_dimension_numbers<[1], [0], [0], [1], [0, 0, 1, 1], [], []>} : vector<2x32xf32>, vector<32x128xf32>, vector<2x128xf32> -> vector<2x128xf32>
    %93 = arith.addf %92, %46 : vector<2x128xf32>
    %c2 = arith.constant 2 : index
    %c0_45 = arith.constant 0 : index
    %c0_46 = arith.constant 0 : index
    %94 = vector.load %arg3[%c2, %c0_45, %c0_46] : memref<8x2x128xf32, #tpu.memory_space<vmem>>, vector<1x2x128xf32>
    %95 = vector.shape_cast %94 : vector<1x2x128xf32> to vector<2x128xf32>
    %96 = vector.shape_cast %93 : vector<2x128xf32> to vector<1x2x128xf32>
    tpu.vector_store %arg3[%c2, %c0_45, %c0_46], %96 {strides = array<i32>} : memref<8x2x128xf32, #tpu.memory_space<vmem>>, vector<1x2x128xf32>,
    %cst_47 = arith.constant dense<0xFF800000> : vector<2xf32>
    %97 = vector.multi_reduction <maximumf>, %93, %cst_47 [1] : vector<2x128xf32> to vector<2xf32>
    %98 = vector.shape_cast %97 : vector<2xf32> to vector<2x1xf32>
    %99 = vector.broadcast %98 : vector<2x1xf32> to vector<2x128xf32>
    %100 = arith.cmpf oge, %93, %99 : vector<2x128xf32>
    %c128_i32_48 = arith.constant 128 : i32
    %101 = vector.broadcast %c128_i32_48 : i32 to vector<2x128xi32>
    %102 = arith.select %100, %48, %101 : vector<2x128xi1>, vector<2x128xi32>
    %cst_49 = arith.constant dense<2147483647> : vector<2xi32>
    %103 = vector.multi_reduction <minsi>, %102, %cst_49 [1] : vector<2x128xi32> to vector<2xi32>
    %104 = vector.shape_cast %103 : vector<2xi32> to vector<2x1xi32>
    %105 = vector.broadcast %104 : vector<2x1xi32> to vector<2x128xi32>
    %106 = arith.cmpi eq, %48, %105 : vector<2x128xi32>
    %107 = arith.extui %106 : vector<2x128xi1> to vector<2x128xi32>
    %108 = arith.sitofp %107 : vector<2x128xi32> to vector<2x128xf32>
    %109 = vector.extract_strided_slice %108 {offsets = [0, 0], sizes = [2, 16], strides = [1, 1]} : vector<2x128xf32> to vector<2x16xf32>
    %cst_50 = arith.constant dense<0.000000e+00> : vector<2x32xf32>
    %110 = tpu.matmul %109, %6, %cst_50 {dimension_numbers = #tpu.dot_dimension_numbers<[1], [0], [0], [1], [0, 0, 1, 1], [], []>} : vector<2x16xf32>, vector<16x32xf32>, vector<2x32xf32> -> vector<2x32xf32>
    %c2_51 = arith.constant 2 : index
    %111 = memref.load %arg0[%c2_51] : memref<8xi32, #tpu.memory_space<smem>>
    %c0_i32_52 = arith.constant 0 : i32
    %112 = arith.cmpi sgt, %111, %c0_i32_52 : i32
    %113 = arith.extui %112 : i1 to i32
    %114 = arith.sitofp %113 : i32 to f32
    %115 = vector.extract_strided_slice %47 {offsets = [4, 0], sizes = [2, 32], strides = [1, 1]} : vector<16x32xf32> to vector<2x32xf32>
    %116 = vector.broadcast %114 : f32 to vector<2x32xf32>
    %117 = arith.mulf %116, %115 : vector<2x32xf32>
    %cst_53 = arith.constant 1.000000e+00 : f32
    %118 = arith.subf %cst_53, %114 : f32
    %119 = vector.broadcast %118 : f32 to vector<2x32xf32>
    %120 = arith.mulf %119, %110 : vector<2x32xf32>
    %121 = arith.addf %117, %120 : vector<2x32xf32>
    %cst_54 = arith.constant dense<0.000000e+00> : vector<2x32xf32>
    %122 = tpu.matmul %91, %3, %cst_54 {dimension_numbers = #tpu.dot_dimension_numbers<[1], [0], [0], [1], [0, 0, 1, 1], [], []>} : vector<2x32xf32>, vector<32x32xf32>, vector<2x32xf32> -> vector<2x32xf32>
    %123 = arith.addf %121, %122 : vector<2x32xf32>
    %124 = arith.addf %123, %44 : vector<2x32xf32>
    %125 = math.tanh %124 : vector<2x32xf32>
    %cst_55 = arith.constant dense<0.000000e+00> : vector<2x128xf32>
    %126 = tpu.matmul %125, %5, %cst_55 {dimension_numbers = #tpu.dot_dimension_numbers<[1], [0], [0], [1], [0, 0, 1, 1], [], []>} : vector<2x32xf32>, vector<32x128xf32>, vector<2x128xf32> -> vector<2x128xf32>
    %127 = arith.addf %126, %46 : vector<2x128xf32>
    %c3 = arith.constant 3 : index
    %c0_56 = arith.constant 0 : index
    %c0_57 = arith.constant 0 : index
    %128 = vector.load %arg3[%c3, %c0_56, %c0_57] : memref<8x2x128xf32, #tpu.memory_space<vmem>>, vector<1x2x128xf32>
    %129 = vector.shape_cast %128 : vector<1x2x128xf32> to vector<2x128xf32>
    %130 = vector.shape_cast %127 : vector<2x128xf32> to vector<1x2x128xf32>
    tpu.vector_store %arg3[%c3, %c0_56, %c0_57], %130 {strides = array<i32>} : memref<8x2x128xf32, #tpu.memory_space<vmem>>, vector<1x2x128xf32>,
    %cst_58 = arith.constant dense<0xFF800000> : vector<2xf32>
    %131 = vector.multi_reduction <maximumf>, %127, %cst_58 [1] : vector<2x128xf32> to vector<2xf32>
    %132 = vector.shape_cast %131 : vector<2xf32> to vector<2x1xf32>
    %133 = vector.broadcast %132 : vector<2x1xf32> to vector<2x128xf32>
    %134 = arith.cmpf oge, %127, %133 : vector<2x128xf32>
    %c128_i32_59 = arith.constant 128 : i32
    %135 = vector.broadcast %c128_i32_59 : i32 to vector<2x128xi32>
    %136 = arith.select %134, %48, %135 : vector<2x128xi1>, vector<2x128xi32>
    %cst_60 = arith.constant dense<2147483647> : vector<2xi32>
    %137 = vector.multi_reduction <minsi>, %136, %cst_60 [1] : vector<2x128xi32> to vector<2xi32>
    %138 = vector.shape_cast %137 : vector<2xi32> to vector<2x1xi32>
    %139 = vector.broadcast %138 : vector<2x1xi32> to vector<2x128xi32>
    %140 = arith.cmpi eq, %48, %139 : vector<2x128xi32>
    %141 = arith.extui %140 : vector<2x128xi1> to vector<2x128xi32>
    %142 = arith.sitofp %141 : vector<2x128xi32> to vector<2x128xf32>
    %143 = vector.extract_strided_slice %142 {offsets = [0, 0], sizes = [2, 16], strides = [1, 1]} : vector<2x128xf32> to vector<2x16xf32>
    %cst_61 = arith.constant dense<0.000000e+00> : vector<2x32xf32>
    %144 = tpu.matmul %143, %6, %cst_61 {dimension_numbers = #tpu.dot_dimension_numbers<[1], [0], [0], [1], [0, 0, 1, 1], [], []>} : vector<2x16xf32>, vector<16x32xf32>, vector<2x32xf32> -> vector<2x32xf32>
    %c3_62 = arith.constant 3 : index
    %145 = memref.load %arg0[%c3_62] : memref<8xi32, #tpu.memory_space<smem>>
    %c0_i32_63 = arith.constant 0 : i32
    %146 = arith.cmpi sgt, %145, %c0_i32_63 : i32
    %147 = arith.extui %146 : i1 to i32
    %148 = arith.sitofp %147 : i32 to f32
    %149 = vector.extract_strided_slice %47 {offsets = [6, 0], sizes = [2, 32], strides = [1, 1]} : vector<16x32xf32> to vector<2x32xf32>
    %150 = vector.broadcast %148 : f32 to vector<2x32xf32>
    %151 = arith.mulf %150, %149 : vector<2x32xf32>
    %cst_64 = arith.constant 1.000000e+00 : f32
    %152 = arith.subf %cst_64, %148 : f32
    %153 = vector.broadcast %152 : f32 to vector<2x32xf32>
    %154 = arith.mulf %153, %144 : vector<2x32xf32>
    %155 = arith.addf %151, %154 : vector<2x32xf32>
    %cst_65 = arith.constant dense<0.000000e+00> : vector<2x32xf32>
    %156 = tpu.matmul %125, %3, %cst_65 {dimension_numbers = #tpu.dot_dimension_numbers<[1], [0], [0], [1], [0, 0, 1, 1], [], []>} : vector<2x32xf32>, vector<32x32xf32>, vector<2x32xf32> -> vector<2x32xf32>
    %157 = arith.addf %155, %156 : vector<2x32xf32>
    %158 = arith.addf %157, %44 : vector<2x32xf32>
    %159 = math.tanh %158 : vector<2x32xf32>
    %cst_66 = arith.constant dense<0.000000e+00> : vector<2x128xf32>
    %160 = tpu.matmul %159, %5, %cst_66 {dimension_numbers = #tpu.dot_dimension_numbers<[1], [0], [0], [1], [0, 0, 1, 1], [], []>} : vector<2x32xf32>, vector<32x128xf32>, vector<2x128xf32> -> vector<2x128xf32>
    %161 = arith.addf %160, %46 : vector<2x128xf32>
    %c4 = arith.constant 4 : index
    %c0_67 = arith.constant 0 : index
    %c0_68 = arith.constant 0 : index
    %162 = vector.load %arg3[%c4, %c0_67, %c0_68] : memref<8x2x128xf32, #tpu.memory_space<vmem>>, vector<1x2x128xf32>
    %163 = vector.shape_cast %162 : vector<1x2x128xf32> to vector<2x128xf32>
    %164 = vector.shape_cast %161 : vector<2x128xf32> to vector<1x2x128xf32>
    tpu.vector_store %arg3[%c4, %c0_67, %c0_68], %164 {strides = array<i32>} : memref<8x2x128xf32, #tpu.memory_space<vmem>>, vector<1x2x128xf32>,
    %cst_69 = arith.constant dense<0xFF800000> : vector<2xf32>
    %165 = vector.multi_reduction <maximumf>, %161, %cst_69 [1] : vector<2x128xf32> to vector<2xf32>
    %166 = vector.shape_cast %165 : vector<2xf32> to vector<2x1xf32>
    %167 = vector.broadcast %166 : vector<2x1xf32> to vector<2x128xf32>
    %168 = arith.cmpf oge, %161, %167 : vector<2x128xf32>
    %c128_i32_70 = arith.constant 128 : i32
    %169 = vector.broadcast %c128_i32_70 : i32 to vector<2x128xi32>
    %170 = arith.select %168, %48, %169 : vector<2x128xi1>, vector<2x128xi32>
    %cst_71 = arith.constant dense<2147483647> : vector<2xi32>
    %171 = vector.multi_reduction <minsi>, %170, %cst_71 [1] : vector<2x128xi32> to vector<2xi32>
    %172 = vector.shape_cast %171 : vector<2xi32> to vector<2x1xi32>
    %173 = vector.broadcast %172 : vector<2x1xi32> to vector<2x128xi32>
    %174 = arith.cmpi eq, %48, %173 : vector<2x128xi32>
    %175 = arith.extui %174 : vector<2x128xi1> to vector<2x128xi32>
    %176 = arith.sitofp %175 : vector<2x128xi32> to vector<2x128xf32>
    %177 = vector.extract_strided_slice %176 {offsets = [0, 0], sizes = [2, 16], strides = [1, 1]} : vector<2x128xf32> to vector<2x16xf32>
    %cst_72 = arith.constant dense<0.000000e+00> : vector<2x32xf32>
    %178 = tpu.matmul %177, %6, %cst_72 {dimension_numbers = #tpu.dot_dimension_numbers<[1], [0], [0], [1], [0, 0, 1, 1], [], []>} : vector<2x16xf32>, vector<16x32xf32>, vector<2x32xf32> -> vector<2x32xf32>
    %c4_73 = arith.constant 4 : index
    %179 = memref.load %arg0[%c4_73] : memref<8xi32, #tpu.memory_space<smem>>
    %c0_i32_74 = arith.constant 0 : i32
    %180 = arith.cmpi sgt, %179, %c0_i32_74 : i32
    %181 = arith.extui %180 : i1 to i32
    %182 = arith.sitofp %181 : i32 to f32
    %183 = vector.extract_strided_slice %47 {offsets = [8, 0], sizes = [2, 32], strides = [1, 1]} : vector<16x32xf32> to vector<2x32xf32>
    %184 = vector.broadcast %182 : f32 to vector<2x32xf32>
    %185 = arith.mulf %184, %183 : vector<2x32xf32>
    %cst_75 = arith.constant 1.000000e+00 : f32
    %186 = arith.subf %cst_75, %182 : f32
    %187 = vector.broadcast %186 : f32 to vector<2x32xf32>
    %188 = arith.mulf %187, %178 : vector<2x32xf32>
    %189 = arith.addf %185, %188 : vector<2x32xf32>
    %cst_76 = arith.constant dense<0.000000e+00> : vector<2x32xf32>
    %190 = tpu.matmul %159, %3, %cst_76 {dimension_numbers = #tpu.dot_dimension_numbers<[1], [0], [0], [1], [0, 0, 1, 1], [], []>} : vector<2x32xf32>, vector<32x32xf32>, vector<2x32xf32> -> vector<2x32xf32>
    %191 = arith.addf %189, %190 : vector<2x32xf32>
    %192 = arith.addf %191, %44 : vector<2x32xf32>
    %193 = math.tanh %192 : vector<2x32xf32>
    %cst_77 = arith.constant dense<0.000000e+00> : vector<2x128xf32>
    %194 = tpu.matmul %193, %5, %cst_77 {dimension_numbers = #tpu.dot_dimension_numbers<[1], [0], [0], [1], [0, 0, 1, 1], [], []>} : vector<2x32xf32>, vector<32x128xf32>, vector<2x128xf32> -> vector<2x128xf32>
    %195 = arith.addf %194, %46 : vector<2x128xf32>
    %c5 = arith.constant 5 : index
    %c0_78 = arith.constant 0 : index
    %c0_79 = arith.constant 0 : index
    %196 = vector.load %arg3[%c5, %c0_78, %c0_79] : memref<8x2x128xf32, #tpu.memory_space<vmem>>, vector<1x2x128xf32>
    %197 = vector.shape_cast %196 : vector<1x2x128xf32> to vector<2x128xf32>
    %198 = vector.shape_cast %195 : vector<2x128xf32> to vector<1x2x128xf32>
    tpu.vector_store %arg3[%c5, %c0_78, %c0_79], %198 {strides = array<i32>} : memref<8x2x128xf32, #tpu.memory_space<vmem>>, vector<1x2x128xf32>,
    %cst_80 = arith.constant dense<0xFF800000> : vector<2xf32>
    %199 = vector.multi_reduction <maximumf>, %195, %cst_80 [1] : vector<2x128xf32> to vector<2xf32>
    %200 = vector.shape_cast %199 : vector<2xf32> to vector<2x1xf32>
    %201 = vector.broadcast %200 : vector<2x1xf32> to vector<2x128xf32>
    %202 = arith.cmpf oge, %195, %201 : vector<2x128xf32>
    %c128_i32_81 = arith.constant 128 : i32
    %203 = vector.broadcast %c128_i32_81 : i32 to vector<2x128xi32>
    %204 = arith.select %202, %48, %203 : vector<2x128xi1>, vector<2x128xi32>
    %cst_82 = arith.constant dense<2147483647> : vector<2xi32>
    %205 = vector.multi_reduction <minsi>, %204, %cst_82 [1] : vector<2x128xi32> to vector<2xi32>
    %206 = vector.shape_cast %205 : vector<2xi32> to vector<2x1xi32>
    %207 = vector.broadcast %206 : vector<2x1xi32> to vector<2x128xi32>
    %208 = arith.cmpi eq, %48, %207 : vector<2x128xi32>
    %209 = arith.extui %208 : vector<2x128xi1> to vector<2x128xi32>
    %210 = arith.sitofp %209 : vector<2x128xi32> to vector<2x128xf32>
    %211 = vector.extract_strided_slice %210 {offsets = [0, 0], sizes = [2, 16], strides = [1, 1]} : vector<2x128xf32> to vector<2x16xf32>
    %cst_83 = arith.constant dense<0.000000e+00> : vector<2x32xf32>
    %212 = tpu.matmul %211, %6, %cst_83 {dimension_numbers = #tpu.dot_dimension_numbers<[1], [0], [0], [1], [0, 0, 1, 1], [], []>} : vector<2x16xf32>, vector<16x32xf32>, vector<2x32xf32> -> vector<2x32xf32>
    %c5_84 = arith.constant 5 : index
    %213 = memref.load %arg0[%c5_84] : memref<8xi32, #tpu.memory_space<smem>>
    %c0_i32_85 = arith.constant 0 : i32
    %214 = arith.cmpi sgt, %213, %c0_i32_85 : i32
    %215 = arith.extui %214 : i1 to i32
    %216 = arith.sitofp %215 : i32 to f32
    %217 = vector.extract_strided_slice %47 {offsets = [10, 0], sizes = [2, 32], strides = [1, 1]} : vector<16x32xf32> to vector<2x32xf32>
    %218 = vector.broadcast %216 : f32 to vector<2x32xf32>
    %219 = arith.mulf %218, %217 : vector<2x32xf32>
    %cst_86 = arith.constant 1.000000e+00 : f32
    %220 = arith.subf %cst_86, %216 : f32
    %221 = vector.broadcast %220 : f32 to vector<2x32xf32>
    %222 = arith.mulf %221, %212 : vector<2x32xf32>
    %223 = arith.addf %219, %222 : vector<2x32xf32>
    %cst_87 = arith.constant dense<0.000000e+00> : vector<2x32xf32>
    %224 = tpu.matmul %193, %3, %cst_87 {dimension_numbers = #tpu.dot_dimension_numbers<[1], [0], [0], [1], [0, 0, 1, 1], [], []>} : vector<2x32xf32>, vector<32x32xf32>, vector<2x32xf32> -> vector<2x32xf32>
    %225 = arith.addf %223, %224 : vector<2x32xf32>
    %226 = arith.addf %225, %44 : vector<2x32xf32>
    %227 = math.tanh %226 : vector<2x32xf32>
    %cst_88 = arith.constant dense<0.000000e+00> : vector<2x128xf32>
    %228 = tpu.matmul %227, %5, %cst_88 {dimension_numbers = #tpu.dot_dimension_numbers<[1], [0], [0], [1], [0, 0, 1, 1], [], []>} : vector<2x32xf32>, vector<32x128xf32>, vector<2x128xf32> -> vector<2x128xf32>
    %229 = arith.addf %228, %46 : vector<2x128xf32>
    %c6 = arith.constant 6 : index
    %c0_89 = arith.constant 0 : index
    %c0_90 = arith.constant 0 : index
    %230 = vector.load %arg3[%c6, %c0_89, %c0_90] : memref<8x2x128xf32, #tpu.memory_space<vmem>>, vector<1x2x128xf32>
    %231 = vector.shape_cast %230 : vector<1x2x128xf32> to vector<2x128xf32>
    %232 = vector.shape_cast %229 : vector<2x128xf32> to vector<1x2x128xf32>
    tpu.vector_store %arg3[%c6, %c0_89, %c0_90], %232 {strides = array<i32>} : memref<8x2x128xf32, #tpu.memory_space<vmem>>, vector<1x2x128xf32>,
    %cst_91 = arith.constant dense<0xFF800000> : vector<2xf32>
    %233 = vector.multi_reduction <maximumf>, %229, %cst_91 [1] : vector<2x128xf32> to vector<2xf32>
    %234 = vector.shape_cast %233 : vector<2xf32> to vector<2x1xf32>
    %235 = vector.broadcast %234 : vector<2x1xf32> to vector<2x128xf32>
    %236 = arith.cmpf oge, %229, %235 : vector<2x128xf32>
    %c128_i32_92 = arith.constant 128 : i32
    %237 = vector.broadcast %c128_i32_92 : i32 to vector<2x128xi32>
    %238 = arith.select %236, %48, %237 : vector<2x128xi1>, vector<2x128xi32>
    %cst_93 = arith.constant dense<2147483647> : vector<2xi32>
    %239 = vector.multi_reduction <minsi>, %238, %cst_93 [1] : vector<2x128xi32> to vector<2xi32>
    %240 = vector.shape_cast %239 : vector<2xi32> to vector<2x1xi32>
    %241 = vector.broadcast %240 : vector<2x1xi32> to vector<2x128xi32>
    %242 = arith.cmpi eq, %48, %241 : vector<2x128xi32>
    %243 = arith.extui %242 : vector<2x128xi1> to vector<2x128xi32>
    %244 = arith.sitofp %243 : vector<2x128xi32> to vector<2x128xf32>
    %245 = vector.extract_strided_slice %244 {offsets = [0, 0], sizes = [2, 16], strides = [1, 1]} : vector<2x128xf32> to vector<2x16xf32>
    %cst_94 = arith.constant dense<0.000000e+00> : vector<2x32xf32>
    %246 = tpu.matmul %245, %6, %cst_94 {dimension_numbers = #tpu.dot_dimension_numbers<[1], [0], [0], [1], [0, 0, 1, 1], [], []>} : vector<2x16xf32>, vector<16x32xf32>, vector<2x32xf32> -> vector<2x32xf32>
    %c6_95 = arith.constant 6 : index
    %247 = memref.load %arg0[%c6_95] : memref<8xi32, #tpu.memory_space<smem>>
    %c0_i32_96 = arith.constant 0 : i32
    %248 = arith.cmpi sgt, %247, %c0_i32_96 : i32
    %249 = arith.extui %248 : i1 to i32
    %250 = arith.sitofp %249 : i32 to f32
    %251 = vector.extract_strided_slice %47 {offsets = [12, 0], sizes = [2, 32], strides = [1, 1]} : vector<16x32xf32> to vector<2x32xf32>
    %252 = vector.broadcast %250 : f32 to vector<2x32xf32>
    %253 = arith.mulf %252, %251 : vector<2x32xf32>
    %cst_97 = arith.constant 1.000000e+00 : f32
    %254 = arith.subf %cst_97, %250 : f32
    %255 = vector.broadcast %254 : f32 to vector<2x32xf32>
    %256 = arith.mulf %255, %246 : vector<2x32xf32>
    %257 = arith.addf %253, %256 : vector<2x32xf32>
    %cst_98 = arith.constant dense<0.000000e+00> : vector<2x32xf32>
    %258 = tpu.matmul %227, %3, %cst_98 {dimension_numbers = #tpu.dot_dimension_numbers<[1], [0], [0], [1], [0, 0, 1, 1], [], []>} : vector<2x32xf32>, vector<32x32xf32>, vector<2x32xf32> -> vector<2x32xf32>
    %259 = arith.addf %257, %258 : vector<2x32xf32>
    %260 = arith.addf %259, %44 : vector<2x32xf32>
    %261 = math.tanh %260 : vector<2x32xf32>
    %cst_99 = arith.constant dense<0.000000e+00> : vector<2x128xf32>
    %262 = tpu.matmul %261, %5, %cst_99 {dimension_numbers = #tpu.dot_dimension_numbers<[1], [0], [0], [1], [0, 0, 1, 1], [], []>} : vector<2x32xf32>, vector<32x128xf32>, vector<2x128xf32> -> vector<2x128xf32>
    %263 = arith.addf %262, %46 : vector<2x128xf32>
    %c7 = arith.constant 7 : index
    %c0_100 = arith.constant 0 : index
    %c0_101 = arith.constant 0 : index
    %264 = vector.load %arg3[%c7, %c0_100, %c0_101] : memref<8x2x128xf32, #tpu.memory_space<vmem>>, vector<1x2x128xf32>
    %265 = vector.shape_cast %264 : vector<1x2x128xf32> to vector<2x128xf32>
    %266 = vector.shape_cast %263 : vector<2x128xf32> to vector<1x2x128xf32>
    tpu.vector_store %arg3[%c7, %c0_100, %c0_101], %266 {strides = array<i32>} : memref<8x2x128xf32, #tpu.memory_space<vmem>>, vector<1x2x128xf32>,
    return
  }
}

</mosaic_0001>

<bundles_post_ra>
// kernel: vae_forward.1
= control target key start
LH: loop header
LB: loop body
LE: loop exit
PB: predicated region body
PF: predicated region fallthrough
CT: control target
= control target key end

     0   :  { %10 = vsyncpa [#allocation4], 0  ;;  %s3503_s0 = inlined_call_operand.vmem [shape: s32[8], index: 0, kind: input, shape index: {}]   ;;  %s3504_s1 = inlined_call_operand.vmem [shape: f32[224,128], index: 1, kind: input, shape index: {}]   ;;  %s3505_s2 = inlined_call_operand.vmem [shape: f32[48,128], index: 2, kind: input, shape index: {}]   ;;  %s3506_s3 = inlined_call_operand.hbm [shape: f32[8,2,128], index: 3, kind: output, shape index: {0}]   ;;  %s3507_s4 = inlined_call_operand.vmem [shape: f32[2,128], index: 4, kind: output, shape index: {1}]  }
   0x1   :  { %11 = vsyncpa [#allocation3], 0  ;;  %s18_s17 = sshll.u32 %s3503_s0, 4  ;;  %s19_s17 = int_to_ptr.vmem [resolvable:$true] %s18_s17 }
   0x2   :  { %s3058_s18 = scalar_lea.vmem %s19_s17, 16  ;;  %p3063_p1 = scmp.lt.s32.totalorder %s19_s17, %s19_s17 }
   0x3   :  { %p3059_p0 = scmp.ne.s32.totalorder %s19_s17, %s3058_s18  ;;  %p3064_p2 = scmp.lt.s32.totalorder %s3058_s18, %s3058_s18 }
   0x5   :  { %p3065_p3 = por %p3064_p2, %p3063_p1 }
   0x7   :  { %p3066_p4 = pnand %p3065_p3, %p3059_p0 }
   0x9   :  { %3069 = shalt.err (!%p3066_p4)
}
   0xa   :  { %s3096_s19 = smov [#allocation2]  }
   0xb   :  { %21 = dma.vmem_to_smem %s19_s17, 16, %s3096_s19, [#allocation4]  }
   0xc   :  { %3092 = dma.done.wait [#allocation4], 16  }
   0xd   :  { %3093 = vsyncadd [#allocation4], 4294967280 }
   0xe   :  { %29 = sfence }
   0xf   :  { %v63_v0 = vld [vmem:[%s3505_s2] sm:$0xff]  ;;  %v64_v1 = vld [vmem:[%s3505_s2 + $0x8] sm:$0xff]  ;;  %v3097_v2 = vmov 0.0|0.0   ;;  %vm3098_vm0 = vmmov 0   ;;  %v3099_v4 = vmov 0.0   ;;  %vm73_vm1 = vcmask 261120  }
  0x10   :  { %2897 = vmatprep.subr.bf16.mxu1 %v3097_v2  ;;  %v2898_v3 = vpack.c.bf16 %v64_v1, %v63_v0  ;;  %2638 = vmatprep.mubr.msk.f32.mxu1 %vm3098_vm0, %v3099_v4  ;;  %714 = vst [vmem:[#allocation5] sm:$0x3] %v3099_v4  ;;  %v30_v5 = vld [vmem:[%s3504_s1] sm:$0xff]  ;;  %v31_v6 = vld [vmem:[%s3504_s1 + $0x8] sm:$0xff]  ;;  %v32_v8 = vld [vmem:[%s3504_s1 + $0x10] sm:$0xff]  ;;  %vm157_vm2 = vcmask 130048  }
  0x11   :  { %v2889_v7 = vpack.c.bf16 %v31_v6, %v30_v5  ;;  %v33_v9 = vld [vmem:[%s3504_s1 + $0x18] sm:$0xff]  ;;  %2631 = vmatprep.mubr.msk.f32.mxu0 %vm73_vm1, %v63_v0  ;;  %v34_v10 = vld [vmem:[%s3504_s1 + $0x20] sm:$0xff]  ;;  %v65_v11 = vld [vmem:[%s3505_s2 + $0x10] sm:$0x3]  ;;  %s3100_s26 = smov 8   ;;  %s3101_s20 = smov 120  }
  0x12   :  { %2899 = vmatpush3.bf16.msra.mxu1 %v2898_v3  ;;  %v2893_v12 = vpack.c.bf16 %v33_v9, %v32_v8  ;;  %v35_v13 = vld [vmem:[%s3504_s1 + $0x28] sm:$0xff]  ;;  %v36_v15 = vld [vmem:[%s3504_s1 + $0x30] sm:$0xff]  ;;  %v37_v16 = vld [vmem:[%s3504_s1 + $0x38] sm:$0xff]  ;;  %vm477_vm3 = vcmask 64512   ;;  %vm866_vm4 = vcmask 1041408   ;;  %s2479_s21 = sld [smem:[#allocation2 + $0x2]] }
  0x13   :  { %2890 = vmatprep.subr.bf16.mxu0 %v2889_v7  ;;  %2900 = vmatprep.subr.bf16.mxu1 %v3097_v2  ;;  %v2901_v14 = vpack.c.bf16 %v35_v13, %v34_v10  ;;  %v2904_v17 = vpack.c.bf16 %v37_v16, %v36_v15  ;;  %v2454_v22 = vld [vmem:[%s3504_s1 + $0xd8] ss:$0 sm:$0xff]  ;;  %v38_v28 = vld [vmem:[%s3504_s1 + $0x40] sm:$0xff]  ;;  %v39_v29 = vld [vmem:[%s3504_s1 + $0x48] sm:$0xff]  ;;  %s2484_s0 = sld [smem:[#allocation2 + $0x3]]  ;;  %s2489_s27 = sld [smem:[#allocation2 + $0x4]] }
  0x14   :  { %2892 = vmatpush3.bf16.msra.mxu0 %v2889_v7  ;;  %v40_v30 = vld [vmem:[%s3504_s1 + $0x50] sm:$0xff]  ;;  %v2910_v31 = vpack.c.bf16 %v39_v29, %v38_v28  ;;  %v41_v32 = vld [vmem:[%s3504_s1 + $0x58] sm:$0xff]  ;;  %v54_v51 = vld [vmem:[%s3504_s1 + $0xc0] sm:$0xff]  ;;  %s2494_s5 = sld [smem:[#allocation2 + $0x5]]  ;;  %s2499_s9 = sld [smem:[#allocation2 + $0x6]] }
  0x15   :  { %2639 = vmatmul.mubr.msk.f32.vlgmr.msra.gmra.mrb[0].mxu1 %vm157_vm2, %v65_v11  ;;  %2894 = vmatprep.subr.bf16.mxu0 %v2893_v12  ;;  %v2913_v33 = vpack.c.bf16 %v41_v32, %v40_v30  ;;  %v66_v34 = vld [vmem:[%s3505_s2 + $0x18] sm:$0x3]  ;;  %v56_v42 = vld [vmem:[%s3504_s1 + $0xd0] sm:$0xff]  ;;  %v2461_v43 = vld [vmem:[%s3504_s1 + $0xda] ss:$0 sm:$0xff]  ;;  %s3102_s13 = smov [#allocation5]  }
  0x16   :  { %2902 = vmatpush3.bf16.msra.mxu1 %v2901_v14  ;;  %2649 = vmatprep.mubr.msk.f32.mxu1 %vm3098_vm0, %v3099_v4  ;;  %v2458_v35 = vld [vmem:[%s3504_s1 + $0xd9] ss:$0 sm:$0xff]  ;;  %v55_v52 = vld [vmem:[%s3504_s1 + $0xc8] sm:$0xff]  ;;  %v67_v53 = vld [vmem:[%s3505_s2 + $0x20] sm:$0xff]  ;;  %s2438_s14 = sshll.u32 %s3102_s13, 4  ;;  %s2439_s14 = int_to_ptr.vmem [resolvable:$true] %s2438_s14 }
  0x17   :  { %2903 = vmatprep.subr.bf16.mxu1 %v3097_v2  ;;  %461 = vrot.lane.b32.xlu0 %v66_v34, %s3100_s26  ;;  %v3230_v55 = vpack.c.bf16 %v55_v52, %v54_v51  ;;  %v42_v56 = vld [vmem:[%s3504_s1 + $0x60] sm:$0xff]  ;;  %v43_v57 = vld [vmem:[%s3504_s1 + $0x68] sm:$0xff]  ;;  %v49_v3 = vld [vmem:[%s3504_s1 + $0x98] sm:$0xff]  ;;  %p3075_p12 = scmp.lt.s32.totalorder %s2439_s14, %s2439_s14 }
  0x18   :  { %2896 = vmatpush3.bf16.msra.mxu0 %v2893_v12  ;;  %v68_v60 = vld [vmem:[%s3505_s2 + $0x28] sm:$0xff]  ;;  %v3244_v61 = vpack.c.bf16 %v43_v57, %v42_v56  ;;  %v46_v62 = vld [vmem:[%s3504_s1 + $0x80] sm:$0xff]  ;;  %v44_v7 = vld [vmem:[%s3504_s1 + $0x70] sm:$0xff]  ;;  %p1228_p6 = scmp.gt.s32.totalorder %s2479_s21, 0 }
  0x19   :  { %2906 = vmatprep.subr.bf16.mxu0 %v3097_v2  ;;  %v47_v63 = vld [vmem:[%s3504_s1 + $0x88] sm:$0xff]  ;;  %v45_v8 = vld [vmem:[%s3504_s1 + $0x78] sm:$0xff]  ;;  %p1491_p7 = scmp.gt.s32.totalorder %s2484_s0, 0  ;;  %p1754_p8 = scmp.gt.s32.totalorder %s2489_s27, 0 }
  0x1a   :  { %2905 = vmatpush3.bf16.msra.mxu1 %v2904_v17  ;;  %v2916_v0 = vpack.c.bf16 %v47_v63, %v46_v62  ;;  %v3277_v9 = vpack.c.bf16 %v45_v8, %v44_v7  ;;  %v2463_v12 = vld [vmem:[%s3504_s1 + $0xdb] ss:$0 sm:$0xff]  ;;  %s1229_s22 = scalar_select %p1228_p6, 1, 0 }
  0x1b   :  { %2632 = vmatmul.mubr.msk.f32.vlgmr.msra.gmra.mrb[0].mxu0 %vm73_vm1, %v64_v1  ;;  %2670 = vmatprep.subr.mxu1 %v3099_v4  ;;  %v48_v1 = vld [vmem:[%s3504_s1 + $0x90] sm:$0xff]  ;;  %s1492_s24 = scalar_select %p1491_p7, 1, 0 }
  0x1c   :  { %2656 = vmatprep.mubr.msk.f32.mxu0 %vm3098_vm0, %v3099_v4  ;;  %v2919_v6 = vpack.c.bf16 %v49_v3, %v48_v1  ;;  %s1230_s2 = scvt.s32.f32 %s1229_s22  ;;  %p2008_p9 = scmp.gt.s32.totalorder %s2494_s5, 0 }
  0x1d   :  { %s1493_s25 = scvt.s32.f32 %s1492_s24  ;;  %p2269_p10 = scmp.gt.s32.totalorder %s2499_s9, 0 }
  0x1e   :  { %s1233_s23 = ssub.f32 1.0, %s1230_s2 }
  0x1f   :  { %s1755_s28 = scalar_select %p1754_p8, 1, 0 }
  0x20   :  { %s2009_s6 = scalar_select %p2008_p9, 1, 0 }
  0x21   :  { %s1756_s29 = scvt.s32.f32 %s1755_s28 }
  0x22   :  { %s2010_s7 = scvt.s32.f32 %s2009_s6 }
  0x23   :  { %s1759_s30 = ssub.f32 1.0, %s1756_s29 }
  0x24   :  { %s2013_s8 = ssub.f32 1.0, %s2010_s7 }
  0x25   :  { %s2270_s10 = scalar_select %p2269_p10, 1, 0 }
  0x27   :  { %s2271_s11 = scvt.s32.f32 %s2270_s10 }
  0x29   :  { %s2274_s12 = ssub.f32 1.0, %s2271_s11 }
  0x89   :  { %v462_v50 = vpop.permute.xlu0 %461 }
  0xe8   :  { %v227_v18 = vpop.f32.mrb[0].mxu1 }
  0xe9   :  { %v2640_v19 = vpop.f32.mrb[1].mxu1  ;;  %2650 = vmatmul.mubr.msk.f32.vlgmr.msra.gmra.mrb[2].mxu1 %vm73_vm1, %v227_v18  ;;  %v50_v18 = vld [vmem:[%s3504_s1 + $0xa0] sm:$0xff] }
  0xea   :  { %2672 = vmatprep.mubr.msk.f32.mxu1 %vm3098_vm0, %v3099_v4  ;;  %2671 = vmatpush3.msra.mxu1 %v56_v42  ;;  %v51_v19 = vld [vmem:[%s3504_s1 + $0xa8] sm:$0xff] }
  0xeb   :  { %2915 = vmatprep.subr.bf16.mxu1 %v3097_v2 }
  0xee   :  { %v2633_v20 = vpop.f32.mrb[0].mxu0 }
  0xef   :  { %v146_v21 = vpop.f32.mrb[1].mxu0  ;;  %v152_v23 = vadd.f32 %v2633_v20, %v2454_v22  ;;  %v52_v20 = vld [vmem:[%s3504_s1 + $0xb0] sm:$0xff] }
  0xf0   :  { %v147_v24 = vadd.f32 %v2454_v22, %v146_v21  ;;  %v3302_v21 = vpack.c.bf16 %v51_v19, %v50_v18  ;;  %v53_v22 = vld [vmem:[%s3504_s1 + $0xb8] sm:$0xff] }
  0xf1   :  { %3036 = vtanh.f32 %v152_v23  ;;  %v3308_v23 = vpack.c.bf16 %v53_v22, %v52_v20 }
  0xf2   :  { %3038 = vtanh.f32 %v147_v24  ;;  %v2465_v24 = vld [vmem:[%s3504_s1 + $0xdc] ss:$0 sm:$0xff] }
  0xfb   :  { %v3037_v25 = vpop.eup %3036 }
  0xfc   :  { %v3039_v26 = vpop.eup %3038 }
  0xfd   :  { %v2907_v27 = vpack.c.bf16 %v3037_v25, %v3039_v26 }
  0xff   :  { %2908 = vmatpush3.bf16.msra.mxu0 %v2907_v27 }
 0x100   :  { %2909 = vmatprep.subr.bf16.mxu0 %v3097_v2 }
 0x102   :  { %2657 = vmatmul.mubr.msk.f32.vlgmr.msra.gmra.mrb[2].mxu0 %vm157_vm2, %v65_v11 }
 0x103   :  { %2911 = vmatpush3.bf16.msra.mxu0 %v2910_v31  ;;  %2667 = vmatprep.mubr.msk.f32.mxu0 %vm3098_vm0, %v3099_v4  ;;  %v3335_v31 = vld [vmem:[%s3504_s1 + $0xdd] ss:$0 sm:$0xff]  ;;  %s2474_s1 = sld [smem:[#allocation2 + $0x1]] }
 0x104   :  { %2912 = vmatprep.subr.bf16.mxu0 %v3097_v2 }
 0x107   :  { %2914 = vmatpush3.bf16.msra.mxu0 %v2913_v33 }
 0x108   :  { %2922 = vmatprep.subr.bf16.mxu0 %v3230_v55 }
 0x109   :  { %p964_p5 = scmp.gt.s32.totalorder %s2474_s1, 0 }
 0x10b   :  { %s965_s18 = scalar_select %p964_p5, 1, 0 }
 0x10d   :  { %s966_s19 = scvt.s32.f32 %s965_s18 }
 0x1bc   :  { %v304_v36 = vpop.f32.mrb[2].mxu1 }
 0x1bd   :  { %v305_v37 = vadd.f32 %v2458_v35, %v304_v36  ;;  %v2651_v38 = vpop.f32.mrb[3].mxu1 }
 0x1be   :  { %v712_v38 = vlaneseq }
 0x1bf   :  { %3040 = vtanh.f32 %v305_v37 }
 0x1c9   :  { %v3041_v39 = vpop.eup %3040 }
 0x1ca   :  { %2668 = vmatmul.mubr.msk.f32.vlgmr.msra.gmra.mrb[4].mxu0 %vm73_vm1, %v3041_v39  ;;  %v3339_v39 = vand.u32 127, %v712_v38 }
 0x1cb   :  { %2690 = vmatprep.mubr.msk.f32.mxu0 %vm157_vm2, %v67_v53  ;;  %2924 = vmatpush3.bf16.msra.mxu0 %v3230_v55 }
 0x1cc   :  { %2925 = vmatprep.subr.bf16.mxu0 %v3097_v2 }
 0x1ce   :  { %2691 = vmatmul.mubr.msk.f32.vlgmr.msra.gmra.mrb[6].mxu0 %vm157_vm2, %v68_v60 }
 0x1cf   :  { %2927 = vmatpush3.bf16.msra.mxu0 %v3244_v61  ;;  %2701 = vmatprep.mubr.msk.f32.mxu0 %vm3098_vm0, %v3099_v4 }
 0x1d0   :  { %2928 = vmatprep.subr.bf16.mxu0 %v3097_v2 }
 0x1d3   :  { %2930 = vmatpush3.bf16.msra.mxu0 %v3277_v9 }
 0x1d4   :  { %2937 = vmatprep.subr.bf16.mxu0 %v3097_v2 }
 0x1d5   :  { %v375_v40 = vpop.f32.mrb[2].mxu0 }
 0x1d6   :  { %v2658_v41 = vpop.f32.mrb[3].mxu0 }
 0x29d   :  { %v452_v44 = vpop.f32.mrb[4].mxu0 }
 0x29e   :  { %v453_v45 = vadd.f32 %v2461_v43, %v452_v44  ;;  %v2669_v46 = vpop.f32.mrb[5].mxu0 }
 0x2a0   :  { %456 = vst [vmem:[%s3507_s4] sm:$0x3] %v453_v45  ;;  %466 = vrot.lane.b32.xlu0 %v453_v45, %s3100_s26  ;;  %v457_v47 = vmul.f32 0.5, %v453_v45  ;;  %s1496_s26 = ssub.f32 1.0, %s1493_s25  ;;  %s3070_s4 = scalar_lea.vmem %s2439_s14, 256 }
 0x2a1   :  { %v3281_v10 = vpop.f32.mrb[6].mxu0  ;;  %p3071_p11 = scmp.ne.s32.totalorder %s2439_s14, %s3070_s4  ;;  %p3076_p13 = scmp.lt.s32.totalorder %s3070_s4, %s3070_s4 }
 0x2a2   :  { %v458_v48 = vmul.f32 1.442695, %v457_v47  ;;  %v3283_v11 = vpop.f32.mrb[7].mxu0 }
 0x2a3   :  { %p3077_p0 = por %p3076_p13, %p3075_p12 }
 0x2a4   :  { %3042 = vpow2.f32 %v458_v48 }
 0x2a5   :  { %p3078_p1 = pnand %p3077_p0, %p3071_p11 }
 0x2ae   :  { %v3043_v49 = vpop.eup %3042 }
 0x2af   :  { %v464_v54 = vmul.f32 %v3043_v49, %v462_v50 }
 0x312   :  { %v467_v58 = vpop.permute.xlu0 %466 }
 0x313   :  { %v469_v59 = vadd.f32 %v467_v58, %v464_v54  ;;  %v967_v58 = vstv %s966_s19 }
 0x314   :  { %v968_v62 = vmul.f32 %v967_v58, %v3283_v11 }
 0x315   :  { %475 = vrot.lane.b32.xlu1 %v469_v59, %s3101_s20  ;;  %s969_s20 = ssub.f32 1.0, %s966_s19 }
 0x317   :  { %v970_v56 = vstv %s969_s20 }
 0x387   :  { %v476_v5 = vpop.permute.xlu1 %475 }
 0x388   :  { %2673 = vmatmul.mubr.msk.f32.vlgmr.msra.gmra.mrb[4].mxu1 %vm477_vm3, %v476_v5 }
 0x389   :  { %2917 = vmatpush3.bf16.msra.mxu1 %v2916_v0  ;;  %2683 = vmatprep.mubr.msk.f32.mxu1 %vm3098_vm0, %v3099_v4 }
 0x38a   :  { %2918 = vmatprep.subr.bf16.mxu1 %v3097_v2 }
 0x38d   :  { %2920 = vmatpush3.bf16.msra.mxu1 %v2919_v6 }
 0x38e   :  { %2931 = vmatprep.subr.bf16.mxu1 %v3097_v2 }
 0x390   :  { %2684 = vmatmul.mubr.msk.f32.vlgmr.msra.gmra.mrb[6].mxu1 %vm73_vm1, %v375_v40 }
 0x391   :  { %2712 = vmatprep.mubr.msk.f32.mxu1 %vm3098_vm0, %v3099_v4  ;;  %2933 = vmatpush3.bf16.msra.mxu1 %v3302_v21 }
 0x392   :  { %2934 = vmatprep.subr.bf16.mxu1 %v3097_v2 }
 0x395   :  { %2936 = vmatpush3.bf16.msra.mxu1 %v3308_v23 }
 0x396   :  { %2940 = vmatprep.subr.bf16.mxu1 %v3097_v2 }
 0x45b   :  { %v546_v13 = vpop.f32.mrb[4].mxu1 }
 0x45c   :  { %v547_v14 = vadd.f32 %v2463_v12, %v546_v13  ;;  %v2674_v15 = vpop.f32.mrb[5].mxu1 }
 0x45e   :  { %2702 = vmatmul.mubr.msk.f32.vlgmr.msra.gmra.mrb[8].mxu0 %vm73_vm1, %v547_v14 }
 0x45f   :  { %2939 = vmatpush3.bf16.msra.mxu0 %v3230_v55  ;;  %2719 = vmatprep.mubr.msk.f32.mxu0 %vm3098_vm0, %v3099_v4 }
 0x460   :  { %2946 = vmatprep.subr.bf16.mxu0 %v3097_v2 }
 0x463   :  { %v623_v16 = vpop.f32.mrb[6].mxu1 }
 0x464   :  { %v2685_v17 = vpop.f32.mrb[7].mxu1  ;;  %v3316_v26 = vadd.f32 %v2465_v24, %v623_v16 }
 0x466   :  { %v1051_v5 = vrot.slane %v3316_v26, 6 }
 0x531   :  { %v784_v25 = vpop.f32.mrb[8].mxu0 }
 0x532   :  { %v788_v27 = vadd.f32 %v784_v25, %v3283_v11  ;;  %v2703_v28 = vpop.f32.mrb[9].mxu0 }
 0x534   :  { %v789_v29 = vadd.f32 %v788_v27, %v3316_v26 }
 0x536   :  { %3044 = vtanh.f32 %v789_v29 }
 0x540   :  { %v3045_v30 = vpop.eup %3044 }
 0x541   :  { %2713 = vmatmul.mubr.msk.f32.vlgmr.msra.gmra.mrb[8].mxu1 %vm73_vm1, %v3045_v30 }
 0x542   :  { %2942 = vmatpush3.bf16.msra.mxu1 %v3244_v61  ;;  %2730 = vmatprep.mubr.msk.f32.mxu1 %vm3098_vm0, %v3099_v4 }
 0x543   :  { %2943 = vmatprep.subr.bf16.mxu1 %v3097_v2 }
 0x546   :  { %2945 = vmatpush3.bf16.msra.mxu1 %v3277_v9 }
 0x547   :  { %2952 = vmatprep.subr.bf16.mxu1 %v3097_v2 }
 0x549   :  { %2731 = vmatmul.mubr.msk.f32.vlgmr.msra.gmra.mrb[10].mxu1 %vm73_vm1, %v3045_v30 }
 0x54a   :  { %2954 = vmatpush3.bf16.msra.mxu1 %v3230_v55  ;;  %2748 = vmatprep.mubr.msk.f32.mxu1 %vm3098_vm0, %v3099_v4 }
 0x54b   :  { %2961 = vmatprep.subr.bf16.mxu1 %v3097_v2 }
 0x614   :  { %v860_v32 = vpop.f32.mrb[8].mxu1 }
 0x615   :  { %v861_v33 = vadd.f32 %v3335_v31, %v860_v32  ;;  %v2714_v34 = vpop.f32.mrb[9].mxu1 }
 0x617   :  { %865 = vst [vmem:[#allocation5 + $0x2] sm:$0x3] %v861_v33  ;;  %v867_v35 = vsel %vm866_vm4, %v861_v33, -inf }
 0x618   :  { %868 = vmax.xlane.f32.xlu1 %v867_v35 }
 0x61c   :  { %v1042_v36 = vpop.f32.mrb[10].mxu1 }
 0x61d   :  { %v2732_v37 = vpop.f32.mrb[11].mxu1  ;;  %v1047_v0 = vrot.slane %v1042_v36, 6 }
 0x61e   :  { %v1234_v37 = vstv %s1233_s23 }
 0x6a5   :  { %v869_v40 = vpop.xlane.xlu1 %868 }
 0x6a6   :  { %vm870_vm5 = vcmp.ge.f32.partialorder %v861_v33, %v869_v40  ;;  %v1231_v40 = vstv %s1230_s2 }
 0x6a7   :  { %v871_v41 = vsel %vm870_vm5, %v3339_v39, 128 }
 0x6a8   :  { %v872_v42 = vsel %vm866_vm4, %v871_v41, 2147483647 }
 0x6a9   :  { %v874_v43 = vshra.s32 %v872_v42, 16  ;;  %v873_v45 = vand.u32 65535, %v872_v42 }
 0x6ab   :  { %v876_v44 = vcvt.s32.f32 %v874_v43  ;;  %v875_v47 = vcvt.s32.f32 %v873_v45  ;;  %v1232_v43 = vmul.f32 %v1231_v40, %v3283_v11 }
 0x6ad   :  { %877 = vmin.xlane.f32.xlu0 %v876_v44 }
 0x73a   :  { %v878_v46 = vpop.xlane.xlu0 %877 }
 0x73b   :  { %vm879_vm6 = vcmp.eq.f32.partialorder %v876_v44, %v878_v46  ;;  %v884_v49 = vcvt.f32.s32 %v878_v46 }
 0x73c   :  { %v880_v48 = vsel %vm879_vm6, %v875_v47, inf }
 0x73d   :  { %881 = vmin.xlane.f32.xlu0 %v880_v48  ;;  %v885_v51 = vshll.u32 %v884_v49, 16  ;;  %v1314_v48 = vrot.slane %v3316_v26, 4 }
 0x7ca   :  { %v882_v50 = vpop.xlane.xlu0 %881 }
 0x7cb   :  { %v883_v52 = vcvt.f32.s32 %v882_v50 }
 0x7cd   :  { %v886_v53 = vadd.s32 %v885_v51, %v883_v52 }
 0x7cf   :  { %vm887_vm7 = vcmp.eq.s32.totalorder %v3339_v39, %v886_v53 }
 0x7d0   :  { %v2472_v54 = vsel %vm887_vm7, 1.0, %v3099_v4 }
 0x7d1   :  { %2720 = vmatmul.mubr.msk.f32.vlgmr.msra.gmra.mrb[10].mxu0 %vm157_vm2, %v2472_v54 }
 0x7d2   :  { %2948 = vmatpush3.bf16.msra.mxu0 %v3302_v21  ;;  %2741 = vmatprep.mubr.msk.f32.mxu0 %vm3098_vm0, %v3099_v4 }
 0x7d3   :  { %2949 = vmatprep.subr.bf16.mxu0 %v3097_v2 }
 0x7d6   :  { %2951 = vmatpush3.bf16.msra.mxu0 %v3308_v23 }
 0x7d7   :  { %2955 = vmatprep.subr.bf16.mxu0 %v3097_v2 }
 0x8a4   :  { %v959_v57 = vpop.f32.mrb[10].mxu0 }
 0x8a5   :  { %v971_v59 = vmul.f32 %v970_v56, %v959_v57  ;;  %v2721_v60 = vpop.f32.mrb[11].mxu0 }
 0x8a7   :  { %v973_v63 = vrot.slane %v971_v59, 6 }
 0x8a9   :  { %v975_v1 = vadd.f32 %v973_v63, %v968_v62 }
 0x8ab   :  { %v1049_v3 = vadd.f32 %v1047_v0, %v975_v1 }
 0x8ad   :  { %v1053_v6 = vadd.f32 %v1051_v5, %v1049_v3 }
 0x8af   :  { %3046 = vtanh.f32 %v1053_v6 }
 0x8b9   :  { %v3047_v7 = vpop.eup %3046 }
 0x8ba   :  { %v1056_v8 = vrot.slane %v3047_v7, 2 }
 0x8bc   :  { %2742 = vmatmul.mubr.msk.f32.vlgmr.msra.gmra.mrb[12].mxu0 %vm73_vm1, %v1056_v8 }
 0x8bd   :  { %2957 = vmatpush3.bf16.msra.mxu0 %v3244_v61  ;;  %2759 = vmatprep.mubr.msk.f32.mxu0 %vm3098_vm0, %v3099_v4 }
 0x8be   :  { %2958 = vmatprep.subr.bf16.mxu0 %v3097_v2 }
 0x8c1   :  { %2960 = vmatpush3.bf16.msra.mxu0 %v3277_v9 }
 0x8c2   :  { %2967 = vmatprep.subr.bf16.mxu0 %v3097_v2 }
 0x8c4   :  { %2760 = vmatmul.mubr.msk.f32.vlgmr.msra.gmra.mrb[14].mxu0 %vm73_vm1, %v1056_v8 }
 0x8c5   :  { %2969 = vmatpush3.bf16.msra.mxu0 %v3230_v55  ;;  %2777 = vmatprep.mubr.msk.f32.mxu0 %vm3098_vm0, %v3099_v4 }
 0x8c6   :  { %2976 = vmatprep.subr.bf16.mxu0 %v3097_v2 }
 0x98f   :  { %v1125_v12 = vpop.f32.mrb[12].mxu0 }
 0x990   :  { %v1126_v13 = vadd.f32 %v3335_v31, %v1125_v12  ;;  %v2743_v14 = vpop.f32.mrb[13].mxu0 }
 0x992   :  { %1130 = vst [vmem:[#allocation5 + $0x4] sm:$0x3] %v1126_v13  ;;  %v1131_v15 = vsel %vm866_vm4, %v1126_v13, -inf }
 0x993   :  { %1132 = vmax.xlane.f32.xlu1 %v1131_v15 }
 0x997   :  { %v1306_v16 = vpop.f32.mrb[14].mxu0 }
 0x998   :  { %v2761_v17 = vpop.f32.mrb[15].mxu0  ;;  %v1311_v45 = vrot.slane %v1306_v16, 4 }
 0x999   :  { %v1497_v17 = vstv %s1496_s26 }
 0xa20   :  { %v1133_v18 = vpop.xlane.xlu1 %1132 }
 0xa21   :  { %vm1134_vm8 = vcmp.ge.f32.partialorder %v1126_v13, %v1133_v18 }
 0xa22   :  { %v1135_v19 = vsel %vm1134_vm8, %v3339_v39, 128 }
 0xa23   :  { %v1136_v20 = vsel %vm866_vm4, %v1135_v19, 2147483647  ;;  %v1494_v19 = vstv %s1493_s25 }
 0xa24   :  { %v1138_v22 = vshra.s32 %v1136_v20, 16  ;;  %v1137_v25 = vand.u32 65535, %v1136_v20 }
 0xa26   :  { %v1140_v24 = vcvt.s32.f32 %v1138_v22  ;;  %v1139_v28 = vcvt.s32.f32 %v1137_v25 }
 0xa28   :  { %1141 = vmin.xlane.f32.xlu0 %v1140_v24 }
 0xab5   :  { %v1142_v27 = vpop.xlane.xlu0 %1141 }
 0xab6   :  { %vm1143_vm9 = vcmp.eq.f32.partialorder %v1140_v24, %v1142_v27  ;;  %v1148_v30 = vcvt.f32.s32 %v1142_v27  ;;  %v1495_v24 = vmul.f32 %v1494_v19, %v3283_v11 }
 0xab7   :  { %v1144_v29 = vsel %vm1143_vm9, %v1139_v28, inf }
 0xab8   :  { %1145 = vmin.xlane.f32.xlu1 %v1144_v29  ;;  %v1149_v33 = vshll.u32 %v1148_v30, 16  ;;  %v1577_v30 = vrot.slane %v3316_v26, 2 }
 0xb45   :  { %v1146_v32 = vpop.xlane.xlu1 %1145 }
 0xb46   :  { %v1147_v34 = vcvt.f32.s32 %v1146_v32 }
 0xb48   :  { %v1150_v35 = vadd.s32 %v1149_v33, %v1147_v34 }
 0xb4a   :  { %vm1151_vm10 = vcmp.eq.s32.totalorder %v3339_v39, %v1150_v35 }
 0xb4b   :  { %v2477_v36 = vsel %vm1151_vm10, 1.0, %v3099_v4 }
 0xb4c   :  { %2749 = vmatmul.mubr.msk.f32.vlgmr.msra.gmra.mrb[12].mxu1 %vm157_vm2, %v2477_v36 }
 0xb4d   :  { %2963 = vmatpush3.bf16.msra.mxu1 %v3302_v21  ;;  %2770 = vmatprep.mubr.msk.f32.mxu1 %vm3098_vm0, %v3099_v4 }
 0xb4e   :  { %2964 = vmatprep.subr.bf16.mxu1 %v3097_v2 }
 0xb51   :  { %2966 = vmatpush3.bf16.msra.mxu1 %v3308_v23 }
 0xb52   :  { %2970 = vmatprep.subr.bf16.mxu1 %v3097_v2 }
 0xc1f   :  { %v1223_v38 = vpop.f32.mrb[12].mxu1 }
 0xc20   :  { %v1235_v41 = vmul.f32 %v1234_v37, %v1223_v38  ;;  %v2750_v42 = vpop.f32.mrb[13].mxu1 }
 0xc22   :  { %v1237_v44 = vrot.slane %v1235_v41, 4 }
 0xc24   :  { %v1239_v46 = vadd.f32 %v1237_v44, %v1232_v43 }
 0xc26   :  { %v1313_v47 = vadd.f32 %v1311_v45, %v1239_v46 }
 0xc28   :  { %v1316_v49 = vadd.f32 %v1314_v48, %v1313_v47 }
 0xc2a   :  { %3048 = vtanh.f32 %v1316_v49 }
 0xc34   :  { %v3049_v50 = vpop.eup %3048 }
 0xc35   :  { %v1319_v51 = vrot.slane %v3049_v50, 4 }
 0xc37   :  { %2771 = vmatmul.mubr.msk.f32.vlgmr.msra.gmra.mrb[14].mxu1 %vm73_vm1, %v1319_v51 }
 0xc38   :  { %2972 = vmatpush3.bf16.msra.mxu1 %v3244_v61  ;;  %2788 = vmatprep.mubr.msk.f32.mxu1 %vm3098_vm0, %v3099_v4 }
 0xc39   :  { %2973 = vmatprep.subr.bf16.mxu1 %v3097_v2 }
 0xc3c   :  { %2975 = vmatpush3.bf16.msra.mxu1 %v3277_v9 }
 0xc3d   :  { %2982 = vmatprep.subr.bf16.mxu1 %v3097_v2 }
 0xc3f   :  { %2789 = vmatmul.mubr.msk.f32.vlgmr.msra.gmra.mrb[16].mxu1 %vm73_vm1, %v1319_v51 }
 0xc40   :  { %2984 = vmatpush3.bf16.msra.mxu1 %v3230_v55  ;;  %2806 = vmatprep.mubr.msk.f32.mxu1 %vm3098_vm0, %v3099_v4 }
 0xc41   :  { %2991 = vmatprep.subr.bf16.mxu1 %v3097_v2 }
 0xd0a   :  { %v1388_v52 = vpop.f32.mrb[14].mxu1 }
 0xd0b   :  { %v1389_v53 = vadd.f32 %v3335_v31, %v1388_v52  ;;  %v2772_v54 = vpop.f32.mrb[15].mxu1 }
 0xd0d   :  { %1393 = vst [vmem:[#allocation5 + $0x6] sm:$0x3] %v1389_v53  ;;  %v1394_v56 = vsel %vm866_vm4, %v1389_v53, -inf }
 0xd0e   :  { %1395 = vmax.xlane.f32.xlu0 %v1394_v56 }
 0xd12   :  { %v1569_v57 = vpop.f32.mrb[16].mxu1 }
 0xd13   :  { %v2790_v58 = vpop.f32.mrb[17].mxu1  ;;  %v1574_v27 = vrot.slane %v1569_v57, 2 }
 0xd14   :  { %v1757_v58 = vstv %s1756_s29 }
 0xd9b   :  { %v1396_v59 = vpop.xlane.xlu0 %1395 }
 0xd9c   :  { %vm1397_vm11 = vcmp.ge.f32.partialorder %v1389_v53, %v1396_v59  ;;  %v1760_v59 = vstv %s1759_s30 }
 0xd9d   :  { %v1398_v60 = vsel %vm1397_vm11, %v3339_v39, 128 }
 0xd9e   :  { %v1399_v62 = vsel %vm866_vm4, %v1398_v60, 2147483647 }
 0xd9f   :  { %v1401_v63 = vshra.s32 %v1399_v62, 16  ;;  %v1400_v1 = vand.u32 65535, %v1399_v62  ;;  %v1758_v62 = vmul.f32 %v3281_v10, %v1757_v58 }
 0xda1   :  { %v1403_v0 = vcvt.s32.f32 %v1401_v63  ;;  %v1402_v6 = vcvt.s32.f32 %v1400_v1 }
 0xda3   :  { %1404 = vmin.xlane.f32.xlu1 %v1403_v0 }
 0xe30   :  { %v1405_v3 = vpop.xlane.xlu1 %1404 }
 0xe31   :  { %vm1406_vm12 = vcmp.eq.f32.partialorder %v1403_v0, %v1405_v3  ;;  %v1411_v8 = vcvt.f32.s32 %v1405_v3 }
 0xe32   :  { %v1407_v7 = vsel %vm1406_vm12, %v1402_v6, inf }
 0xe33   :  { %1408 = vmin.xlane.f32.xlu0 %v1407_v7  ;;  %v1412_v13 = vshll.u32 %v1411_v8, 16 }
 0xec0   :  { %v1409_v12 = vpop.xlane.xlu0 %1408 }
 0xec1   :  { %v1410_v14 = vcvt.f32.s32 %v1409_v12 }
 0xec3   :  { %v1413_v15 = vadd.s32 %v1412_v13, %v1410_v14 }
 0xec5   :  { %vm1414_vm13 = vcmp.eq.s32.totalorder %v3339_v39, %v1413_v15 }
 0xec6   :  { %v2482_v16 = vsel %vm1414_vm13, 1.0, %v3099_v4 }
 0xec7   :  { %2778 = vmatmul.mubr.msk.f32.vlgmr.msra.gmra.mrb[16].mxu0 %vm157_vm2, %v2482_v16 }
 0xec8   :  { %2978 = vmatpush3.bf16.msra.mxu0 %v3302_v21  ;;  %2799 = vmatprep.mubr.msk.f32.mxu0 %vm3098_vm0, %v3099_v4 }
 0xec9   :  { %2979 = vmatprep.subr.bf16.mxu0 %v3097_v2 }
 0xecc   :  { %2981 = vmatpush3.bf16.msra.mxu0 %v3308_v23 }
 0xecd   :  { %2985 = vmatprep.subr.bf16.mxu0 %v3097_v2 }
 0xf9a   :  { %v1486_v18 = vpop.f32.mrb[16].mxu0 }
 0xf9b   :  { %v1498_v20 = vmul.f32 %v1497_v17, %v1486_v18  ;;  %v2779_v22 = vpop.f32.mrb[17].mxu0 }
 0xf9d   :  { %v1500_v25 = vrot.slane %v1498_v20, 2 }
 0xf9f   :  { %v1502_v28 = vadd.f32 %v1500_v25, %v1495_v24 }
 0xfa1   :  { %v1576_v29 = vadd.f32 %v1574_v27, %v1502_v28 }
 0xfa3   :  { %v1579_v32 = vadd.f32 %v1577_v30, %v1576_v29 }
 0xfa5   :  { %3050 = vtanh.f32 %v1579_v32 }
 0xfaf   :  { %v3051_v33 = vpop.eup %3050 }
 0xfb0   :  { %v1582_v34 = vrot.slane %v3051_v33, 6 }
 0xfb2   :  { %2800 = vmatmul.mubr.msk.f32.vlgmr.msra.gmra.mrb[18].mxu0 %vm73_vm1, %v1582_v34 }
 0xfb3   :  { %2987 = vmatpush3.bf16.msra.mxu0 %v3244_v61  ;;  %2817 = vmatprep.mubr.msk.f32.mxu0 %vm3098_vm0, %v3099_v4 }
 0xfb4   :  { %2988 = vmatprep.subr.bf16.mxu0 %v3097_v2 }
 0xfb7   :  { %2990 = vmatpush3.bf16.msra.mxu0 %v3277_v9 }
 0xfb8   :  { %2997 = vmatprep.subr.bf16.mxu0 %v3097_v2 }
 0xfba   :  { %2818 = vmatmul.mubr.msk.f32.vlgmr.msra.gmra.mrb[20].mxu0 %vm73_vm1, %v1582_v34 }
 0xfbb   :  { %2999 = vmatpush3.bf16.msra.mxu0 %v3230_v55  ;;  %2835 = vmatprep.mubr.msk.f32.mxu0 %vm3098_vm0, %v3099_v4 }
 0xfbc   :  { %3006 = vmatprep.subr.bf16.mxu0 %v3097_v2 }
0x1085   :  { %v1651_v11 = vpop.f32.mrb[18].mxu0 }
0x1086   :  { %v1652_v35 = vadd.f32 %v3335_v31, %v1651_v11  ;;  %v2801_v36 = vpop.f32.mrb[19].mxu0  ;;  %v2014_v11 = vstv %s2013_s8 }
0x1088   :  { %1656 = vst [vmem:[#allocation5 + $0x8] sm:$0x3] %v1652_v35  ;;  %v1657_v37 = vsel %vm866_vm4, %v1652_v35, -inf }
0x1089   :  { %1658 = vmax.xlane.f32.xlu1 %v1657_v37 }
0x108d   :  { %v1829_v38 = vpop.f32.mrb[20].mxu0 }
0x108e   :  { %v2819_v40 = vpop.f32.mrb[21].mxu0 }
0x1116   :  { %v1659_v41 = vpop.xlane.xlu1 %1658 }
0x1117   :  { %vm1660_vm14 = vcmp.ge.f32.partialorder %v1652_v35, %v1659_v41  ;;  %v2011_v35 = vstv %s2010_s7 }
0x1118   :  { %v1661_v42 = vsel %vm1660_vm14, %v3339_v39, 128  ;;  %v2012_v40 = vmul.f32 %v3281_v10, %v2011_v35 }
0x1119   :  { %v1662_v43 = vsel %vm866_vm4, %v1661_v42, 2147483647 }
0x111a   :  { %v1664_v44 = vshra.s32 %v1662_v43, 16  ;;  %v1663_v46 = vand.u32 65535, %v1662_v43 }
0x111c   :  { %v1666_v45 = vcvt.s32.f32 %v1664_v44  ;;  %v1665_v49 = vcvt.s32.f32 %v1663_v46 }
0x111e   :  { %1667 = vmin.xlane.f32.xlu0 %v1666_v45 }
0x11ab   :  { %v1668_v47 = vpop.xlane.xlu0 %1667 }
0x11ac   :  { %vm1669_vm15 = vcmp.eq.f32.partialorder %v1666_v45, %v1668_v47  ;;  %v1674_v51 = vcvt.f32.s32 %v1668_v47 }
0x11ad   :  { %v1670_v50 = vsel %vm1669_vm15, %v1665_v49, inf }
0x11ae   :  { %1671 = vmin.xlane.f32.xlu1 %v1670_v50  ;;  %v1675_v53 = vshll.u32 %v1674_v51, 16 }
0x123b   :  { %v1672_v52 = vpop.xlane.xlu1 %1671 }
0x123c   :  { %v1673_v54 = vcvt.f32.s32 %v1672_v52 }
0x123e   :  { %v1676_v56 = vadd.s32 %v1675_v53, %v1673_v54 }
0x1240   :  { %vm1677_vm3 = vcmp.eq.s32.totalorder %v3339_v39, %v1676_v56 }
0x1241   :  { %v2487_v57 = vsel %vm1677_vm3, 1.0, %v3099_v4 }
0x1242   :  { %2807 = vmatmul.mubr.msk.f32.vlgmr.msra.gmra.mrb[18].mxu1 %vm157_vm2, %v2487_v57 }
0x1243   :  { %2993 = vmatpush3.bf16.msra.mxu1 %v3302_v21  ;;  %2828 = vmatprep.mubr.msk.f32.mxu1 %vm3098_vm0, %v3099_v4 }
0x1244   :  { %2994 = vmatprep.subr.bf16.mxu1 %v3097_v2 }
0x1247   :  { %2996 = vmatpush3.bf16.msra.mxu1 %v3308_v23 }
0x1248   :  { %3000 = vmatprep.subr.bf16.mxu1 %v3097_v2 }
0x1315   :  { %v1749_v60 = vpop.f32.mrb[18].mxu1 }
0x1316   :  { %v1761_v63 = vmul.f32 %v1760_v59, %v1749_v60  ;;  %v2808_v0 = vpop.f32.mrb[19].mxu1 }
0x1318   :  { %v1762_v1 = vadd.f32 %v1761_v63, %v1758_v62 }
0x131a   :  { %v1833_v3 = vadd.f32 %v1829_v38, %v1762_v1 }
0x131c   :  { %v1834_v6 = vadd.f32 %v1833_v3, %v3316_v26 }
0x131e   :  { %3052 = vtanh.f32 %v1834_v6 }
0x1328   :  { %v3053_v7 = vpop.eup %3052 }
0x1329   :  { %2829 = vmatmul.mubr.msk.f32.vlgmr.msra.gmra.mrb[20].mxu1 %vm73_vm1, %v3053_v7 }
0x132a   :  { %3002 = vmatpush3.bf16.msra.mxu1 %v3244_v61  ;;  %2846 = vmatprep.mubr.msk.f32.mxu1 %vm3098_vm0, %v3099_v4 }
0x132b   :  { %3003 = vmatprep.subr.bf16.mxu1 %v3097_v2 }
0x132e   :  { %3005 = vmatpush3.bf16.msra.mxu1 %v3277_v9 }
0x132f   :  { %3012 = vmatprep.subr.bf16.mxu1 %v3097_v2 }
0x1331   :  { %2847 = vmatmul.mubr.msk.f32.vlgmr.msra.gmra.mrb[22].mxu1 %vm73_vm1, %v3053_v7 }
0x1332   :  { %3014 = vmatpush3.bf16.msra.mxu1 %v3230_v55  ;;  %2864 = vmatprep.mubr.msk.f32.mxu1 %vm3098_vm0, %v3099_v4 }
0x1333   :  { %3021 = vmatprep.subr.bf16.mxu1 %v3097_v2 }
0x13fc   :  { %v1905_v8 = vpop.f32.mrb[20].mxu1 }
0x13fd   :  { %v1906_v12 = vadd.f32 %v3335_v31, %v1905_v8  ;;  %v2830_v13 = vpop.f32.mrb[21].mxu1  ;;  %v2275_v8 = vstv %s2274_s12 }
0x13ff   :  { %1910 = vst [vmem:[#allocation5 + $0xa] sm:$0x3] %v1906_v12  ;;  %v1911_v14 = vsel %vm866_vm4, %v1906_v12, -inf }
0x1400   :  { %1912 = vmax.xlane.f32.xlu0 %v1911_v14 }
0x1404   :  { %v2086_v15 = vpop.f32.mrb[22].mxu1 }
0x1405   :  { %v2848_v16 = vpop.f32.mrb[23].mxu1  ;;  %v2091_v42 = vrot.slane %v2086_v15, 6 }
0x148d   :  { %v1913_v17 = vpop.xlane.xlu0 %1912 }
0x148e   :  { %vm1914_vm5 = vcmp.ge.f32.partialorder %v1906_v12, %v1913_v17 }
0x148f   :  { %v1915_v18 = vsel %vm1914_vm5, %v3339_v39, 128 }
0x1490   :  { %v1916_v55 = vsel %vm866_vm4, %v1915_v18, 2147483647 }
0x1491   :  { %v1918_v19 = vshra.s32 %v1916_v55, 16  ;;  %v1917_v22 = vand.u32 65535, %v1916_v55 }
0x1493   :  { %v1920_v20 = vcvt.s32.f32 %v1918_v19  ;;  %v1919_v25 = vcvt.s32.f32 %v1917_v22 }
0x1495   :  { %1921 = vmin.xlane.f32.xlu1 %v1920_v20 }
0x1522   :  { %v1922_v24 = vpop.xlane.xlu1 %1921 }
0x1523   :  { %vm1923_vm6 = vcmp.eq.f32.partialorder %v1920_v20, %v1922_v24  ;;  %v1928_v28 = vcvt.f32.s32 %v1922_v24 }
0x1524   :  { %v1924_v27 = vsel %vm1923_vm6, %v1919_v25, inf }
0x1525   :  { %1925 = vmin.xlane.f32.xlu0 %v1924_v27  ;;  %v1929_v30 = vshll.u32 %v1928_v28, 16 }
0x15b2   :  { %v1926_v29 = vpop.xlane.xlu0 %1925 }
0x15b3   :  { %v1927_v32 = vcvt.f32.s32 %v1926_v29 }
0x15b5   :  { %v1930_v33 = vadd.s32 %v1929_v30, %v1927_v32 }
0x15b7   :  { %vm1931_vm7 = vcmp.eq.s32.totalorder %v3339_v39, %v1930_v33 }
0x15b8   :  { %v2492_v34 = vsel %vm1931_vm7, 1.0, %v3099_v4 }
0x15b9   :  { %2836 = vmatmul.mubr.msk.f32.vlgmr.msra.gmra.mrb[22].mxu0 %vm157_vm2, %v2492_v34 }
0x15ba   :  { %3008 = vmatpush3.bf16.msra.mxu0 %v3302_v21  ;;  %2857 = vmatprep.mubr.msk.f32.mxu0 %vm3098_vm0, %v3099_v4 }
0x15bb   :  { %3009 = vmatprep.subr.bf16.mxu0 %v3097_v2 }
0x15be   :  { %3011 = vmatpush3.bf16.msra.mxu0 %v3308_v23 }
0x15bf   :  { %3015 = vmatprep.subr.bf16.mxu0 %v3097_v2 }
0x168c   :  { %v2003_v36 = vpop.f32.mrb[22].mxu0 }
0x168d   :  { %v2015_v37 = vmul.f32 %v2014_v11, %v2003_v36  ;;  %v2837_v38 = vpop.f32.mrb[23].mxu0 }
0x168f   :  { %v2017_v41 = vrot.slane %v2015_v37, 6 }
0x1691   :  { %v2019_v43 = vadd.f32 %v2017_v41, %v2012_v40 }
0x1693   :  { %v2093_v44 = vadd.f32 %v2091_v42, %v2019_v43 }
0x1695   :  { %v2094_v45 = vadd.f32 %v2093_v44, %v1051_v5 }
0x1697   :  { %3054 = vtanh.f32 %v2094_v45 }
0x16a1   :  { %v3055_v46 = vpop.eup %3054 }
0x16a2   :  { %v2097_v47 = vrot.slane %v3055_v46, 2 }
0x16a4   :  { %2858 = vmatmul.mubr.msk.f32.vlgmr.msra.gmra.mrb[24].mxu0 %vm73_vm1, %v2097_v47 }
0x16a5   :  { %3017 = vmatpush3.bf16.msra.mxu0 %v3244_v61  ;;  %2875 = vmatprep.mubr.msk.f32.mxu0 %vm3098_vm0, %v3099_v4 }
0x16a6   :  { %3018 = vmatprep.subr.bf16.mxu0 %v3097_v2 }
0x16a9   :  { %3020 = vmatpush3.bf16.msra.mxu0 %v3277_v9 }
0x16ac   :  { %2876 = vmatmul.mubr.msk.f32.vlgmr.msra.gmra.mrb[26].mxu0 %vm73_vm1, %v2097_v47 }
0x1777   :  { %v2166_v49 = vpop.f32.mrb[24].mxu0 }
0x1778   :  { %v2167_v50 = vadd.f32 %v3335_v31, %v2166_v49  ;;  %v2859_v5 = vpop.f32.mrb[25].mxu0 }
0x177a   :  { %2171 = vst [vmem:[#allocation5 + $0xc] sm:$0x3] %v2167_v50  ;;  %v2172_v51 = vsel %vm866_vm4, %v2167_v50, -inf }
0x177b   :  { %2173 = vmax.xlane.f32.xlu1 %v2172_v51 }
0x177f   :  { %v2347_v52 = vpop.f32.mrb[26].mxu0 }
0x1780   :  { %v2877_v53 = vpop.f32.mrb[27].mxu0  ;;  %v2352_v16 = vrot.slane %v2347_v52, 4 }
0x1808   :  { %v2174_v61 = vpop.xlane.xlu1 %2173 }
0x1809   :  { %vm2175_vm8 = vcmp.ge.f32.partialorder %v2167_v50, %v2174_v61 }
0x180a   :  { %v2176_v54 = vsel %vm2175_vm8, %v3339_v39, 128 }
0x180b   :  { %v2177_v56 = vsel %vm866_vm4, %v2176_v54, 2147483647 }
0x180c   :  { %v2179_v57 = vshra.s32 %v2177_v56, 16  ;;  %v2178_v58 = vand.u32 65535, %v2177_v56 }
0x180e   :  { %v2181_v9 = vcvt.s32.f32 %v2179_v57  ;;  %v2180_v60 = vcvt.s32.f32 %v2178_v58 }
0x1810   :  { %2182 = vmin.xlane.f32.xlu0 %v2181_v9 }
0x189d   :  { %v2183_v59 = vpop.xlane.xlu0 %2182 }
0x189e   :  { %vm2184_vm9 = vcmp.eq.f32.partialorder %v2181_v9, %v2183_v59  ;;  %v2189_v63 = vcvt.f32.s32 %v2183_v59 }
0x189f   :  { %v2185_v62 = vsel %vm2184_vm9, %v2180_v60, inf }
0x18a0   :  { %2186 = vmin.xlane.f32.xlu1 %v2185_v62  ;;  %v2190_v1 = vshll.u32 %v2189_v63, 16 }
0x192d   :  { %v2187_v0 = vpop.xlane.xlu1 %2186 }
0x192e   :  { %v2188_v3 = vcvt.f32.s32 %v2187_v0 }
0x1930   :  { %v2191_v6 = vadd.s32 %v2190_v1, %v2188_v3 }
0x1932   :  { %vm2192_vm10 = vcmp.eq.s32.totalorder %v3339_v39, %v2191_v6  ;;  %v2272_v39 = vstv %s2271_s11 }
0x1933   :  { %v2497_v7 = vsel %vm2192_vm10, 1.0, %v3099_v4  ;;  %v2273_v15 = vmul.f32 %v3281_v10, %v2272_v39 }
0x1934   :  { %2865 = vmatmul.mubr.msk.f32.vlgmr.msra.gmra.mrb[24].mxu1 %vm157_vm2, %v2497_v7 }
0x1935   :  { %3023 = vmatpush3.bf16.msra.mxu1 %v3302_v21  ;;  %2886 = vmatprep.mubr.msk.f32.mxu1 %vm3098_vm0, %v3099_v4 }
0x1936   :  { %3024 = vmatprep.subr.bf16.mxu1 %v3097_v2 }
0x1939   :  { %3026 = vmatpush3.bf16.msra.mxu1 %v3308_v23 }
0x1a07   :  { %v2264_v12 = vpop.f32.mrb[24].mxu1 }
0x1a08   :  { %v2276_v13 = vmul.f32 %v2275_v8, %v2264_v12  ;;  %v2866_v14 = vpop.f32.mrb[25].mxu1 }
0x1a0a   :  { %v2278_v21 = vrot.slane %v2276_v13, 4 }
0x1a0c   :  { %v2280_v17 = vadd.f32 %v2278_v21, %v2273_v15 }
0x1a0e   :  { %v2354_v4 = vadd.f32 %v2352_v16, %v2280_v17 }
0x1a10   :  { %v2355_v2 = vadd.f32 %v2354_v4, %v1314_v48 }
0x1a12   :  { %3056 = vtanh.f32 %v2355_v2 }
0x1a1c   :  { %v3057_v23 = vpop.eup %3056 }
0x1a1d   :  { %v2358_v18 = vrot.slane %v3057_v23, 4 }
0x1a1f   :  { %2887 = vmatmul.mubr.msk.f32.vlgmr.msra.gmra.mrb[26].mxu1 %vm73_vm1, %v2358_v18 }
0x1af2   :  { %v2427_v55 = vpop.f32.mrb[26].mxu1 }
0x1af3   :  { %v2428_v19 = vadd.f32 %v3335_v31, %v2427_v55  ;;  %v2888_v20 = vpop.f32.mrb[27].mxu1 }
0x1af5   :  { %2432 = vst [vmem:[#allocation5 + $0xe] sm:$0x3] %v2428_v19 }
0x1af6   :  { %3081 = shalt.err (!%p3078_p1)
}
0x1af7   :  { %s3082_s17 = scalar_lea.hbm %s3506_s3, 256 }
0x1af8   :  { %p3083_p2 = scmp.ne.s32.totalorder %s3506_s3, %s3082_s17  ;;  %p3086_p3 = scmp.lt.u32.totalorder %s3082_s17, %s3506_s3 }
0x1afa   :  { %p3088_p4 = pnand %p3086_p3, %p3083_p2 }
0x1afc   :  { %3091 = shalt.err (!%p3088_p4)
}
0x1afd   :  { %s3103_s21 = smov 32   ;;  %s3104_s22 = smov 2  }
0x1afe   :  { %2444 = dma.vmem_to_hbm [thread:$0]  %s2439_s14, 256, %s3506_s3, [#allocation3], %s3103_s21, %s3103_s21, %s3104_s22  }
0x1aff   :  { %3094 = dma.done.wait [#allocation3], 256  }
0x1b00   :  { %3095 = vsyncadd [#allocation3], 4294967040 }
0x1b01   :  { %2452 = vsyncpa [#allocation3], 1 }
0x1b02   :  { %2453 = vsyncpa [#allocation4], 1 }

</bundles_post_ra>
